<compile_context>
chip_gen: v7x
topology: tpu7x:2x2x1
jax: 0.10.0
libtpu: 0.0.40
codegen_flags: <defaults>
</compile_context>

<pallas_src>
import numpy as np
import jax
import jax.numpy as jnp
from jax import lax
from jax.experimental import pallas as pl
from jax.experimental.pallas import tpu as pltpu


_VMEM_LIMIT_BYTES = 48 * 1024 * 1024   # under v7x's 64 MiB/TC physical VMEM
_ACT_DTYPE = jnp.bfloat16              # MXU operand / activation dtype


# ----------------------------------------------------------------------------
# Tile-size heuristic: rows of the per-tile patch matrix ~ target_rows,
# at least 2 row tiles per image when possible (pipeline depth / megacore).
# ----------------------------------------------------------------------------
def _pick_row_tile(ho, wp, target_rows=512):
    divisors = [d for d in range(1, ho + 1) if ho % d == 0]
    fits = [d for d in divisors if d * wp <= target_rows]
    tr = max(fits) if fits else 1
    if tr == ho and ho > 1:
        tr = max(d for d in divisors if d < ho)
    return tr


# ----------------------------------------------------------------------------
# Pallas kernel: fused conv-as-matmul (+ optional fused shortcut) + bias + ReLU
#   slab_ref : (1, L, Cin)   flattened, halo-extended padded-input rows (bf16)
#   w_ref    : (K, TN)       BN-scale-folded conv weights (bf16)
#   e_ref    : (1, M, Ce|TN) optional shortcut operand tile (bf16)
#   we_ref   : (Ce, TN)      projection-shortcut weights (1x1 conv * BN scale)
#   b_ref    : (1, TN)       folded BN bias (f32)
#   o_ref    : (1, M, TN)
# shortcut_mode: "none" | "proj" | "identity"
# ----------------------------------------------------------------------------
def _make_conv_kernel(tap_offsets, m, shortcut_mode, apply_relu):
    def kernel(*refs):
        if shortcut_mode == "proj":
            slab_ref, w_ref, e_ref, we_ref, b_ref, o_ref = refs
        elif shortcut_mode == "identity":
            slab_ref, w_ref, e_ref, b_ref, o_ref = refs
        else:
            slab_ref, w_ref, b_ref, o_ref = refs

        # The 3x3 taps are sublane-shifted static windows of the VMEM-resident
        # slab; concatenating them along the lane (K) axis turns the conv into
        # one (M, 9*Cin) x (9*Cin, TN) MXU contraction.
        taps = [slab_ref[0, off:off + m, :] for off in tap_offsets]
        lhs = taps[0] if len(taps) == 1 else jnp.concatenate(taps, axis=-1)
        acc = jnp.dot(lhs, w_ref[...], preferred_element_type=jnp.float32)

        if shortcut_mode == "proj":
            acc = acc + jnp.dot(e_ref[0], we_ref[...],
                                preferred_element_type=jnp.float32)
        elif shortcut_mode == "identity":
            acc = acc + e_ref[0].astype(jnp.float32)

        y = acc + b_ref[...]              # folded-BN bias, f32 epilogue
        if apply_relu:
            y = jnp.maximum(y, 0.0)
        o_ref[0] = y.astype(o_ref.dtype)

    return kernel


def _fused_conv_call(slabs, w, bias, extra, we, relu, tap_offsets, m, tn,
                     out_dtype, shortcut_mode):
    B, L, Ck = slabs.shape
    Kw, Cout = w.shape
    n_ct = Cout // tn

    in_specs = [
        pl.BlockSpec((1, L, Ck), lambda b, c: (b, 0, 0)),
        pl.BlockSpec((Kw, tn), lambda b, c: (0, c)),
    ]
    args = [slabs, w]
    if shortcut_mode == "proj":
        Ce = extra.shape[-1]
        in_specs += [
            pl.BlockSpec((1, m, Ce), lambda b, c: (b, 0, 0)),
            pl.BlockSpec((Ce, tn), lambda b, c: (0, c)),
        ]
        args += [extra, we]
    elif shortcut_mode == "identity":
        in_specs.append(pl.BlockSpec((1, m, tn), lambda b, c: (b, 0, c)))
        args.append(extra)
    in_specs.append(pl.BlockSpec((1, tn), lambda b, c: (0, c)))
    args.append(bias)

    kernel = _make_conv_kernel(tap_offsets, m, shortcut_mode, relu)
    return pl.pallas_call(
        kernel,
        out_shape=jax.ShapeDtypeStruct((B, m, Cout), out_dtype),
        grid=(B, n_ct),
        in_specs=in_specs,
        out_specs=pl.BlockSpec((1, m, tn), lambda b, c: (b, 0, c)),
        compiler_params=pltpu.CompilerParams(
            dimension_semantics=("parallel", "parallel"),
            vmem_limit_bytes=_VMEM_LIMIT_BYTES),
    )(*args)


# ----------------------------------------------------------------------------
# 3x3 conv (stride 1, pad 1) + folded BN (+ fused shortcut add) + optional ReLU
# ----------------------------------------------------------------------------
def _conv3x3_bn_act(x, w_hwio, scale, bias, *, relu=True,
                    shortcut_img=None, shortcut_w=None, shortcut_bias=None,
                    shortcut_mode="none", out_dtype=_ACT_DTYPE):
    N, H, W, C = x.shape
    Cout = w_hwio.shape[-1]
    Ho, Wo = H, W
    Wp = W + 2                               # padded width (incl. garbage cols)
    TR = _pick_row_tile(Ho, Wp)
    n_rt = Ho // TR
    M = TR * Wp                              # rows of the per-tile patch matrix
    L = (TR + 2) * Wp + 2                    # slab length (2-row halo + tail)

    # One zero-padded copy in HBM; row-tile slabs carry only a 2-row halo.
    xp = jnp.pad(x.astype(_ACT_DTYPE), ((0, 0), (1, 1), (1, 1), (0, 0)))
    xpf = jnp.pad(xp.reshape(N, (H + 2) * Wp, C), ((0, 0), (0, 2), (0, 0)))
    slabs = jnp.stack(
        [xpf[:, r * TR * Wp: r * TR * Wp + L, :] for r in range(n_rt)],
        axis=1).reshape(N * n_rt, L, C)

    # Fold BN scale into the conv weights; flatten taps into K = 9*Cin.
    wf = (w_hwio * scale).reshape(9 * C, Cout).astype(_ACT_DTYPE)
    tap_offsets = tuple(dy * Wp + dx for dy in range(3) for dx in range(3))

    bias_tot = bias
    extra = we = None
    mode = shortcut_mode if shortcut_img is not None else "none"
    if shortcut_img is not None:
        Ce = shortcut_img.shape[-1]
        e = jnp.pad(shortcut_img.astype(_ACT_DTYPE),
                    ((0, 0), (0, 0), (0, 2), (0, 0)))        # width Wo -> Wp
        extra = e.reshape(N * n_rt, M, Ce)
        if mode == "proj":
            we = shortcut_w.astype(_ACT_DTYPE)
        if shortcut_bias is not None:
            bias_tot = bias + shortcut_bias

    tn = 128 if Cout % 128 == 0 else Cout
    out = _fused_conv_call(slabs, wf,
                           bias_tot.astype(jnp.float32).reshape(1, Cout),
                           extra, we, relu, tap_offsets, M, tn, out_dtype,
                           mode)
    # Drop the 2 garbage width columns produced by the flattened-slab trick.
    return out.reshape(N, Ho, Wp, Cout)[:, :, :Wo, :]


# ----------------------------------------------------------------------------
# Strided (stride > 1) 3x3 conv fallback for down-sampling blocks.
# TODO(synk): this path still materializes the 9 taps in HBM (wrapper im2col);
# it is only taken by the first conv of a down-sampling block and is not hit
# by the stride=1 test below.
# ----------------------------------------------------------------------------
def _conv3x3_bn_act_strided(x, w_hwio, scale, bias, stride, relu, out_dtype):
    N, H, W, C = x.shape
    Cout = w_hwio.shape[-1]
    Ho = (H - 1) // stride + 1
    Wo = (W - 1) // stride + 1

    xp = jnp.pad(x.astype(_ACT_DTYPE), ((0, 0), (1, 1), (1, 1), (0, 0)))
    taps = []
    for dy in range(3):
        for dx in range(3):
            sl = xp[:, dy:dy + (Ho - 1) * stride + 1:stride,
                       dx:dx + (Wo - 1) * stride + 1:stride, :]
            taps.append(sl.reshape(N, Ho * Wo, C))
    patches = jnp.concatenate(taps, axis=-1)                 # (N, M, 9C) bf16

    m_full = Ho * Wo
    tm = _pick_row_tile(m_full, 1, target_rows=512)
    n_mt = m_full // tm
    patches = patches.reshape(N * n_mt, tm, 9 * C)

    wf = (w_hwio * scale).reshape(9 * C, Cout).astype(_ACT_DTYPE)
    tn = 128 if Cout % 128 == 0 else Cout
    out = _fused_conv_call(patches, wf,
                           bias.astype(jnp.float32).reshape(1, Cout),
                           None, None, relu, (0,), tm, tn, out_dtype, "none")
    return out.reshape(N, Ho, Wo, Cout)


# ----------------------------------------------------------------------------
# BasicBlock forward
# ----------------------------------------------------------------------------
def basic_block_forward(x_nchw, params, stride=1):
    x = jnp.transpose(x_nchw, (0, 2, 3, 1))                  # NCHW -> NHWC
    N, H, W, Cin = x.shape
    Cout = params["w1"].shape[-1]

    # residual branch, first conv: conv3x3(stride) + BN1 + ReLU
    if stride == 1:
        y1 = _conv3x3_bn_act(x, params["w1"], params["scale1"],
                             params["bias1"], relu=True, out_dtype=_ACT_DTYPE)
    else:
        y1 = _conv3x3_bn_act_strided(x, params["w1"], params["scale1"],
                                     params["bias1"], stride, relu=True,
                                     out_dtype=_ACT_DTYPE)

    # shortcut operand (fused into the second conv's contraction / epilogue)
    if stride != 1 or Cin != Cout:
        sc_img = x[:, ::stride, ::stride, :]
        sc_w = params["ws"][0, 0] * params["scales"]         # fold BN scale
        sc_bias = params["biass"]
        sc_mode = "proj"
    else:
        sc_img = x                                           # identity add
        sc_w = None
        sc_bias = None
        sc_mode = "identity"

    # second conv: conv3x3(1) + BN2, fused with +shortcut and final ReLU
    out = _conv3x3_bn_act(y1, params["w2"], params["scale2"], params["bias2"],
                          relu=True, shortcut_img=sc_img, shortcut_w=sc_w,
                          shortcut_bias=sc_bias, shortcut_mode=sc_mode,
                          out_dtype=jnp.float32)
    return jnp.transpose(out, (0, 3, 1, 2)).astype(x_nchw.dtype)


# ----------------------------------------------------------------------------
# Deterministic synthetic parameters (BN running stats folded into scale/bias)
# ----------------------------------------------------------------------------
def init_params(key, cin, cout):
    keys = jax.random.split(key, 15)
    eps = 1e-5

    def bn_fold(kg, kb, km, kv, c):
        gamma = 1.0 + 0.1 * jax.random.normal(kg, (c,), jnp.float32)
        beta = 0.1 * jax.random.normal(kb, (c,), jnp.float32)
        mean = 0.1 * jax.random.normal(km, (c,), jnp.float32)
        var = jax.random.uniform(kv, (c,), jnp.float32, 0.5, 1.5)
        scale = gamma / jnp.sqrt(var + eps)
        bias = beta - mean * scale
        return scale, bias

    w1 = 0.1 * jax.random.normal(keys[0], (3, 3, cin, cout), jnp.float32)   # HWIO
    w2 = 0.1 * jax.random.normal(keys[1], (3, 3, cout, cout), jnp.float32)
    ws = 0.1 * jax.random.normal(keys[2], (1, 1, cin, cout), jnp.float32)
    s1, b1 = bn_fold(keys[3], keys[4], keys[5], keys[6], cout)
    s2, b2 = bn_fold(keys[7], keys[8], keys[9], keys[10], cout)
    ss, bs = bn_fold(keys[11], keys[12], keys[13], keys[14], cout)
    return dict(w1=w1, scale1=s1, bias1=b1,
                w2=w2, scale2=s2, bias2=b2,
                ws=ws, scales=ss, biass=bs)


# ----------------------------------------------------------------------------
# Pure-JAX f32 reference (lax.conv) for correctness checking
# ----------------------------------------------------------------------------
def reference_forward(x_nchw, params, stride, cin, cout):
    x = jnp.transpose(x_nchw, (0, 2, 3, 1)).astype(jnp.float32)
    dn = ("NHWC", "HWIO", "NHWC")
    y1 = lax.conv_general_dilated(x, params["w1"], (stride, stride),
                                  ((1, 1), (1, 1)), dimension_numbers=dn)
    y1 = jnp.maximum(y1 * params["scale1"] + params["bias1"], 0.0)
    y2 = lax.conv_general_dilated(y1, params["w2"], (1, 1),
                                  ((1, 1), (1, 1)), dimension_numbers=dn)
    y2 = y2 * params["scale2"] + params["bias2"]
    if stride != 1 or cin != cout:
        sc = lax.conv_general_dilated(x, params["ws"], (stride, stride),
                                      ((0, 0), (0, 0)), dimension_numbers=dn)
        sc = sc * params["scales"] + params["biass"]
    else:
        sc = x
    out = jnp.maximum(y2 + sc, 0.0)
    return jnp.transpose(out, (0, 3, 1, 2))


if __name__ == "__main__":
    configs = [
        dict(cin=4, cout=8, stride=1),   # projection shortcut (1x1 conv + BN)
        dict(cin=8, cout=8, stride=1),   # identity shortcut (direct f32 add)
    ]
    key = jax.random.PRNGKey(0)
    for cfg in configs:
        key, kx, kp = jax.random.split(key, 3)
        cin, cout, stride = cfg["cin"], cfg["cout"], cfg["stride"]

        x = jax.random.normal(kx, (2, cin, 16, 16), jnp.float32)   # NCHW
        params = init_params(kp, cin, cout)

        fwd = jax.jit(lambda xx: basic_block_forward(xx, params, stride))
        out = jax.block_until_ready(fwd(x))

        ref = reference_forward(x, params, stride, cin, cout)
        assert out.shape == (2, cout, 16, 16), out.shape
        # bf16 MXU operands + bf16 intermediate activation -> bf16-level tolerance
        np.testing.assert_allclose(np.asarray(out), np.asarray(ref),
                                   rtol=3e-2, atol=5e-2)
    print("KERNEL_OK")
</pallas_src>

<mosaic_0001>
module attributes {stable_mosaic.version = 11 : i64} {
  func.func @kernel(%arg0: i32, %arg1: i32, %arg2: memref<1x182x4xbf16, #tpu.memory_space<vmem>>, %arg3: memref<36x8xbf16, #tpu.memory_space<vmem>>, %arg4: memref<1x8xf32, #tpu.memory_space<vmem>>, %arg5: memref<1x144x8xbf16, #tpu.memory_space<vmem>>) attributes {dimension_semantics = [#tpu.dimension_semantics<parallel>, #tpu.dimension_semantics<parallel>], iteration_bounds = array<i64: 4, 1>, scalar_prefetch = 0 : i64, scratch_operands = 0 : i64, tpu.core_type = #tpu.core_type<tc>, window_params = [{transform_indices = @transform_0, window_bounds = array<i64: 1, 182, 4>}, {transform_indices = @transform_1, window_bounds = array<i64: 36, 8>}, {transform_indices = @transform_2, window_bounds = array<i64: 1, 8>}, {transform_indices = @transform_3, window_bounds = array<i64: 1, 144, 8>}]} {
    %c0 = arith.constant 0 : index
    %c0_0 = arith.constant 0 : index
    %c0_1 = arith.constant 0 : index
    %0 = vector.load %arg2[%c0, %c0_0, %c0_1] : memref<1x182x4xbf16, #tpu.memory_space<vmem>>, vector<1x144x4xbf16>
    %1 = vector.shape_cast %0 : vector<1x144x4xbf16> to vector<144x4xbf16>
    %c0_2 = arith.constant 0 : index
    %c1 = arith.constant 1 : index
    %c0_3 = arith.constant 0 : index
    %2 = vector.load %arg2[%c0_2, %c1, %c0_3] : memref<1x182x4xbf16, #tpu.memory_space<vmem>>, vector<1x144x4xbf16>
    %3 = vector.shape_cast %2 : vector<1x144x4xbf16> to vector<144x4xbf16>
    %c0_4 = arith.constant 0 : index
    %c2 = arith.constant 2 : index
    %c0_5 = arith.constant 0 : index
    %4 = vector.load %arg2[%c0_4, %c2, %c0_5] : memref<1x182x4xbf16, #tpu.memory_space<vmem>>, vector<1x144x4xbf16>
    %5 = vector.shape_cast %4 : vector<1x144x4xbf16> to vector<144x4xbf16>
    %c0_6 = arith.constant 0 : index
    %c18 = arith.constant 18 : index
    %c0_7 = arith.constant 0 : index
    %6 = vector.load %arg2[%c0_6, %c18, %c0_7] : memref<1x182x4xbf16, #tpu.memory_space<vmem>>, vector<1x144x4xbf16>
    %7 = vector.shape_cast %6 : vector<1x144x4xbf16> to vector<144x4xbf16>
    %c0_8 = arith.constant 0 : index
    %c19 = arith.constant 19 : index
    %c0_9 = arith.constant 0 : index
    %8 = vector.load %arg2[%c0_8, %c19, %c0_9] : memref<1x182x4xbf16, #tpu.memory_space<vmem>>, vector<1x144x4xbf16>
    %9 = vector.shape_cast %8 : vector<1x144x4xbf16> to vector<144x4xbf16>
    %c0_10 = arith.constant 0 : index
    %c20 = arith.constant 20 : index
    %c0_11 = arith.constant 0 : index
    %10 = vector.load %arg2[%c0_10, %c20, %c0_11] : memref<1x182x4xbf16, #tpu.memory_space<vmem>>, vector<1x144x4xbf16>
    %11 = vector.shape_cast %10 : vector<1x144x4xbf16> to vector<144x4xbf16>
    %c0_12 = arith.constant 0 : index
    %c36 = arith.constant 36 : index
    %c0_13 = arith.constant 0 : index
    %12 = vector.load %arg2[%c0_12, %c36, %c0_13] : memref<1x182x4xbf16, #tpu.memory_space<vmem>>, vector<1x144x4xbf16>
    %13 = vector.shape_cast %12 : vector<1x144x4xbf16> to vector<144x4xbf16>
    %c0_14 = arith.constant 0 : index
    %c37 = arith.constant 37 : index
    %c0_15 = arith.constant 0 : index
    %14 = vector.load %arg2[%c0_14, %c37, %c0_15] : memref<1x182x4xbf16, #tpu.memory_space<vmem>>, vector<1x144x4xbf16>
    %15 = vector.shape_cast %14 : vector<1x144x4xbf16> to vector<144x4xbf16>
    %c0_16 = arith.constant 0 : index
    %c38 = arith.constant 38 : index
    %c0_17 = arith.constant 0 : index
    %16 = vector.load %arg2[%c0_16, %c38, %c0_17] : memref<1x182x4xbf16, #tpu.memory_space<vmem>>, vector<1x144x4xbf16>
    %17 = vector.shape_cast %16 : vector<1x144x4xbf16> to vector<144x4xbf16>
    %18 = tpu.concatenate %1, %3, %5, %7, %9, %11, %13, %15, %17 in 1 : vector<144x4xbf16>, vector<144x4xbf16>, vector<144x4xbf16>, vector<144x4xbf16>, vector<144x4xbf16>, vector<144x4xbf16>, vector<144x4xbf16>, vector<144x4xbf16>, vector<144x4xbf16> -> vector<144x36xbf16>
    %c0_18 = arith.constant 0 : index
    %c0_19 = arith.constant 0 : index
    %19 = vector.load %arg3[%c0_18, %c0_19] : memref<36x8xbf16, #tpu.memory_space<vmem>>, vector<36x8xbf16>
    %cst = arith.constant dense<0.000000e+00> : vector<144x8xf32>
    %20 = tpu.matmul %18, %19, %cst {dimension_numbers = #tpu.dot_dimension_numbers<[1], [0], [0], [1], [0, 0, 1, 1], [], []>} : vector<144x36xbf16>, vector<36x8xbf16>, vector<144x8xf32> -> vector<144x8xf32>
    %c0_20 = arith.constant 0 : index
    %c0_21 = arith.constant 0 : index
    %21 = vector.load %arg4[%c0_20, %c0_21] : memref<1x8xf32, #tpu.memory_space<vmem>>, vector<1x8xf32>
    %22 = vector.broadcast %21 : vector<1x8xf32> to vector<144x8xf32>
    %23 = arith.addf %20, %22 : vector<144x8xf32>
    %cst_22 = arith.constant 0.000000e+00 : f32
    %24 = vector.broadcast %cst_22 : f32 to vector<144x8xf32>
    %25 = arith.maximumf %23, %24 : vector<144x8xf32>
    %26 = arith.truncf %25 : vector<144x8xf32> to vector<144x8xbf16>
    %c0_23 = arith.constant 0 : index
    %c0_24 = arith.constant 0 : index
    %c0_25 = arith.constant 0 : index
    %27 = vector.load %arg5[%c0_23, %c0_24, %c0_25] : memref<1x144x8xbf16, #tpu.memory_space<vmem>>, vector<1x144x8xbf16>
    %28 = vector.shape_cast %27 : vector<1x144x8xbf16> to vector<144x8xbf16>
    %29 = vector.shape_cast %26 : vector<144x8xbf16> to vector<1x144x8xbf16>
    tpu.vector_store %arg5[%c0_23, %c0_24, %c0_25], %29 {strides = array<i32>} : memref<1x144x8xbf16, #tpu.memory_space<vmem>>, vector<1x144x8xbf16>,
    return
  }
  func.func @transform_0(%arg0: i32, %arg1: i32) -> (i32, i32, i32) {
    %c0_i32 = arith.constant 0 : i32
    %c0_i32_0 = arith.constant 0 : i32
    %c0_i32_1 = arith.constant 0 : i32
    return %arg0, %c0_i32, %c0_i32_0 : i32, i32, i32
  }
  func.func @transform_1(%arg0: i32, %arg1: i32) -> (i32, i32) {
    %c0_i32 = arith.constant 0 : i32
    %c0_i32_0 = arith.constant 0 : i32
    return %c0_i32, %arg1 : i32, i32
  }
  func.func @transform_2(%arg0: i32, %arg1: i32) -> (i32, i32) {
    %c0_i32 = arith.constant 0 : i32
    %c0_i32_0 = arith.constant 0 : i32
    return %c0_i32, %arg1 : i32, i32
  }
  func.func @transform_3(%arg0: i32, %arg1: i32) -> (i32, i32, i32) {
    %c0_i32 = arith.constant 0 : i32
    %c0_i32_0 = arith.constant 0 : i32
    return %arg0, %c0_i32, %arg1 : i32, i32, i32
  }
}

module attributes {stable_mosaic.version = 11 : i64} {
  func.func @kernel(%arg0: i32, %arg1: i32, %arg2: memref<1x182x8xbf16, #tpu.memory_space<vmem>>, %arg3: memref<72x8xbf16, #tpu.memory_space<vmem>>, %arg4: memref<1x144x4xbf16, #tpu.memory_space<vmem>>, %arg5: memref<4x8xbf16, #tpu.memory_space<vmem>>, %arg6: memref<1x8xf32, #tpu.memory_space<vmem>>, %arg7: memref<1x144x8xf32, #tpu.memory_space<vmem>>) attributes {dimension_semantics = [#tpu.dimension_semantics<parallel>, #tpu.dimension_semantics<parallel>], iteration_bounds = array<i64: 4, 1>, scalar_prefetch = 0 : i64, scratch_operands = 0 : i64, tpu.core_type = #tpu.core_type<tc>, window_params = [{transform_indices = @transform_0, window_bounds = array<i64: 1, 182, 8>}, {transform_indices = @transform_1, window_bounds = array<i64: 72, 8>}, {transform_indices = @transform_2, window_bounds = array<i64: 1, 144, 4>}, {transform_indices = @transform_3, window_bounds = array<i64: 4, 8>}, {transform_indices = @transform_4, window_bounds = array<i64: 1, 8>}, {transform_indices = @transform_5, window_bounds = array<i64: 1, 144, 8>}]} {
    %c0 = arith.constant 0 : index
    %c0_0 = arith.constant 0 : index
    %c0_1 = arith.constant 0 : index
    %0 = vector.load %arg2[%c0, %c0_0, %c0_1] : memref<1x182x8xbf16, #tpu.memory_space<vmem>>, vector<1x144x8xbf16>
    %1 = vector.shape_cast %0 : vector<1x144x8xbf16> to vector<144x8xbf16>
    %c0_2 = arith.constant 0 : index
    %c1 = arith.constant 1 : index
    %c0_3 = arith.constant 0 : index
    %2 = vector.load %arg2[%c0_2, %c1, %c0_3] : memref<1x182x8xbf16, #tpu.memory_space<vmem>>, vector<1x144x8xbf16>
    %3 = vector.shape_cast %2 : vector<1x144x8xbf16> to vector<144x8xbf16>
    %c0_4 = arith.constant 0 : index
    %c2 = arith.constant 2 : index
    %c0_5 = arith.constant 0 : index
    %4 = vector.load %arg2[%c0_4, %c2, %c0_5] : memref<1x182x8xbf16, #tpu.memory_space<vmem>>, vector<1x144x8xbf16>
    %5 = vector.shape_cast %4 : vector<1x144x8xbf16> to vector<144x8xbf16>
    %c0_6 = arith.constant 0 : index
    %c18 = arith.constant 18 : index
    %c0_7 = arith.constant 0 : index
    %6 = vector.load %arg2[%c0_6, %c18, %c0_7] : memref<1x182x8xbf16, #tpu.memory_space<vmem>>, vector<1x144x8xbf16>
    %7 = vector.shape_cast %6 : vector<1x144x8xbf16> to vector<144x8xbf16>
    %c0_8 = arith.constant 0 : index
    %c19 = arith.constant 19 : index
    %c0_9 = arith.constant 0 : index
    %8 = vector.load %arg2[%c0_8, %c19, %c0_9] : memref<1x182x8xbf16, #tpu.memory_space<vmem>>, vector<1x144x8xbf16>
    %9 = vector.shape_cast %8 : vector<1x144x8xbf16> to vector<144x8xbf16>
    %c0_10 = arith.constant 0 : index
    %c20 = arith.constant 20 : index
    %c0_11 = arith.constant 0 : index
    %10 = vector.load %arg2[%c0_10, %c20, %c0_11] : memref<1x182x8xbf16, #tpu.memory_space<vmem>>, vector<1x144x8xbf16>
    %11 = vector.shape_cast %10 : vector<1x144x8xbf16> to vector<144x8xbf16>
    %c0_12 = arith.constant 0 : index
    %c36 = arith.constant 36 : index
    %c0_13 = arith.constant 0 : index
    %12 = vector.load %arg2[%c0_12, %c36, %c0_13] : memref<1x182x8xbf16, #tpu.memory_space<vmem>>, vector<1x144x8xbf16>
    %13 = vector.shape_cast %12 : vector<1x144x8xbf16> to vector<144x8xbf16>
    %c0_14 = arith.constant 0 : index
    %c37 = arith.constant 37 : index
    %c0_15 = arith.constant 0 : index
    %14 = vector.load %arg2[%c0_14, %c37, %c0_15] : memref<1x182x8xbf16, #tpu.memory_space<vmem>>, vector<1x144x8xbf16>
    %15 = vector.shape_cast %14 : vector<1x144x8xbf16> to vector<144x8xbf16>
    %c0_16 = arith.constant 0 : index
    %c38 = arith.constant 38 : index
    %c0_17 = arith.constant 0 : index
    %16 = vector.load %arg2[%c0_16, %c38, %c0_17] : memref<1x182x8xbf16, #tpu.memory_space<vmem>>, vector<1x144x8xbf16>
    %17 = vector.shape_cast %16 : vector<1x144x8xbf16> to vector<144x8xbf16>
    %18 = tpu.concatenate %1, %3, %5, %7, %9, %11, %13, %15, %17 in 1 : vector<144x8xbf16>, vector<144x8xbf16>, vector<144x8xbf16>, vector<144x8xbf16>, vector<144x8xbf16>, vector<144x8xbf16>, vector<144x8xbf16>, vector<144x8xbf16>, vector<144x8xbf16> -> vector<144x72xbf16>
    %c0_18 = arith.constant 0 : index
    %c0_19 = arith.constant 0 : index
    %19 = vector.load %arg3[%c0_18, %c0_19] : memref<72x8xbf16, #tpu.memory_space<vmem>>, vector<72x8xbf16>
    %cst = arith.constant dense<0.000000e+00> : vector<144x8xf32>
    %20 = tpu.matmul %18, %19, %cst {dimension_numbers = #tpu.dot_dimension_numbers<[1], [0], [0], [1], [0, 0, 1, 1], [], []>} : vector<144x72xbf16>, vector<72x8xbf16>, vector<144x8xf32> -> vector<144x8xf32>
    %c0_20 = arith.constant 0 : index
    %c0_21 = arith.constant 0 : index
    %c0_22 = arith.constant 0 : index
    %21 = vector.load %arg4[%c0_20, %c0_21, %c0_22] : memref<1x144x4xbf16, #tpu.memory_space<vmem>>, vector<1x144x4xbf16>
    %22 = vector.shape_cast %21 : vector<1x144x4xbf16> to vector<144x4xbf16>
    %c0_23 = arith.constant 0 : index
    %c0_24 = arith.constant 0 : index
    %23 = vector.load %arg5[%c0_23, %c0_24] : memref<4x8xbf16, #tpu.memory_space<vmem>>, vector<4x8xbf16>
    %cst_25 = arith.constant dense<0.000000e+00> : vector<144x8xf32>
    %24 = tpu.matmul %22, %23, %cst_25 {dimension_numbers = #tpu.dot_dimension_numbers<[1], [0], [0], [1], [0, 0, 1, 1], [], []>} : vector<144x4xbf16>, vector<4x8xbf16>, vector<144x8xf32> -> vector<144x8xf32>
    %25 = arith.addf %20, %24 : vector<144x8xf32>
    %c0_26 = arith.constant 0 : index
    %c0_27 = arith.constant 0 : index
    %26 = vector.load %arg6[%c0_26, %c0_27] : memref<1x8xf32, #tpu.memory_space<vmem>>, vector<1x8xf32>
    %27 = vector.broadcast %26 : vector<1x8xf32> to vector<144x8xf32>
    %28 = arith.addf %25, %27 : vector<144x8xf32>
    %cst_28 = arith.constant 0.000000e+00 : f32
    %29 = vector.broadcast %cst_28 : f32 to vector<144x8xf32>
    %30 = arith.maximumf %28, %29 : vector<144x8xf32>
    %c0_29 = arith.constant 0 : index
    %c0_30 = arith.constant 0 : index
    %c0_31 = arith.constant 0 : index
    %31 = vector.load %arg7[%c0_29, %c0_30, %c0_31] : memref<1x144x8xf32, #tpu.memory_space<vmem>>, vector<1x144x8xf32>
    %32 = vector.shape_cast %31 : vector<1x144x8xf32> to vector<144x8xf32>
    %33 = vector.shape_cast %30 : vector<144x8xf32> to vector<1x144x8xf32>
    tpu.vector_store %arg7[%c0_29, %c0_30, %c0_31], %33 {strides = array<i32>} : memref<1x144x8xf32, #tpu.memory_space<vmem>>, vector<1x144x8xf32>,
    return
  }
  func.func @transform_0(%arg0: i32, %arg1: i32) -> (i32, i32, i32) {
    %c0_i32 = arith.constant 0 : i32
    %c0_i32_0 = arith.constant 0 : i32
    %c0_i32_1 = arith.constant 0 : i32
    return %arg0, %c0_i32, %c0_i32_0 : i32, i32, i32
  }
  func.func @transform_1(%arg0: i32, %arg1: i32) -> (i32, i32) {
    %c0_i32 = arith.constant 0 : i32
    %c0_i32_0 = arith.constant 0 : i32
    return %c0_i32, %arg1 : i32, i32
  }
  func.func @transform_2(%arg0: i32, %arg1: i32) -> (i32, i32, i32) {
    %c0_i32 = arith.constant 0 : i32
    %c0_i32_0 = arith.constant 0 : i32
    %c0_i32_1 = arith.constant 0 : i32
    return %arg0, %c0_i32, %c0_i32_0 : i32, i32, i32
  }
  func.func @transform_3(%arg0: i32, %arg1: i32) -> (i32, i32) {
    %c0_i32 = arith.constant 0 : i32
    %c0_i32_0 = arith.constant 0 : i32
    return %c0_i32, %arg1 : i32, i32
  }
  func.func @transform_4(%arg0: i32, %arg1: i32) -> (i32, i32) {
    %c0_i32 = arith.constant 0 : i32
    %c0_i32_0 = arith.constant 0 : i32
    return %c0_i32, %arg1 : i32, i32
  }
  func.func @transform_5(%arg0: i32, %arg1: i32) -> (i32, i32, i32) {
    %c0_i32 = arith.constant 0 : i32
    %c0_i32_0 = arith.constant 0 : i32
    return %arg0, %c0_i32, %arg1 : i32, i32, i32
  }
}

</mosaic_0001>

<bundles_post_ra>
// kernel: _lambda_.2
= control target key start
LH: loop header
LB: loop body
LE: loop exit
PB: predicated region body
PF: predicated region fallthrough
CT: control target
= control target key end

     0   :  { %s1519_s12 = smov 0   ;;  %s1521_s13 = smov 0   ;;  %s2281_s0 = inlined_call_operand.vmem [shape: bf16[4,182,4], index: 0, kind: input, shape index: {}]   ;;  %s2282_s1 = inlined_call_operand.vmem [shape: bf16[36,8], index: 1, kind: input, shape index: {}]   ;;  %s2283_s2 = inlined_call_operand.vmem [shape: f32[1,8], index: 2, kind: input, shape index: {}]   ;;  %s2284_s3 = inlined_call_operand.vmem [shape: bf16[4,144,8], index: 3, kind: output, shape index: {}]  }
   0x1   :  { %s1523_s14 = smov 0  }
   0x2 LB: > { %s25_s15 = sadd.s32 1, %s1483_s13  ;;  %p1270_p0 = scmp.ge.s32.totalorder %s1487_s14, 1  ;;  %s1487_s14 = sphi %s1523_s14, %s13_s14   ;;  %s1483_s13 = sphi %s1521_s13, %s2338_s13   ;;  %s1479_s12 = sphi %s1519_s12, %s2337_s12  }
   0x3   : > { %p27_p1 = scmp.ge.s32.totalorder %s25_s15, 4  ;;  %p168_p2 = scmp.lt.s32.totalorder %s1487_s14, 5 }
   0x5   : > { %s2340_s15 = smov (%p27_p1, %s25_s15), 0  ;;  %p169_p3 = pnand %p1270_p0, %p168_p2 }
   0x7   : > { %172 = sbr.rel (%p169_p3) target bundleno = 505 (0x1f9), region = 32 }
   0xe   : > { %p202_p4 = scmp.lt.s32.totalorder %s1479_s12, 3  ;;  %vm401_vm0 = vcmask 1046528   ;;  %vm553_vm1 = vcmask 1045504   ;;  %vm705_vm2 = vcmask 1044480   ;;  %v2289_v0 = vmov 0.0   ;;  %v1459_v1 = vld [vmem:[%s2282_s1] sm:$0xff]  }
   0xf   : > { %1357 = vmatprep.subr.bf16.mxu0 %v2289_v0  ;;  %1399 = vmatprep.subr.bf16.mxu1 %v2289_v0  ;;  %vm303_vm3 = vsmask.f32 7424  ;;  %vm477_vm4 = vsmask.f32 6400  ;;  %s1490_s22 = smov 12   ;;  %s1491_s23 = smov 8  }
  0x10   : > { %s2342_s12 = smov (!%p202_p4, %s1479_s12), 3  ;;  %1358 = vmatpush3.bf16.msra.mxu0 %v1459_v1  ;;  %1402 = vmatpush3.bf16.msra.mxu1 %v1459_v1  ;;  %vm629_vm5 = vsmask.f32 5376  ;;  %s1492_s24 = smov 24   ;;  %v1461_v58 = vld [vmem:[%s2282_s1 + $0x8] sm:$0xff]   ;;  %vm941_vm6 = vcmask 1041408  }
  0x11   : > { %s1405_s16 = smul.u32 92, %s2342_s12  ;;  %1359 = vmatprep.subr.bf16.mxu0 %v2289_v0  ;;  %1400 = vmatprep.subr.bf16.mxu1 %v2289_v0  ;;  %s1493_s25 = smov 20   ;;  %vm1498_vm7 = vmmov 0   ;;  %vm743_vm8 = vcmask 31744   ;;  %vm762_vm9 = vcmask 64512   ;;  %vm781_vm10 = vcmask 97280  }
  0x12   : > { %s1494_s28 = smov 32   ;;  %s1495_s29 = smov 4   ;;  %vm800_vm11 = vcmask 130048   ;;  %vm819_vm12 = vcmask 162816   ;;  %vm838_vm13 = vcmask 195584   ;;  %vm857_vm14 = vcmask 228352  }
  0x13   : > { %s1543_s19 = scalar_lea.vmem %s2281_s0, %s1405_s16  ;;  %s1496_s30 = smov 16   ;;  %vm876_vm15 = vcmask 261120  }
  0x14   : > { %v226_v2 = vld [vmem:[%s1543_s19 + $0xc] sm:$0xf]  ;;  %v227_v3 = vld [vmem:[%s1543_s19 + $0x10] sm:$0xf]  ;;  %v228_v4 = vld [vmem:[%s1543_s19 + $0x14] sm:$0xf]  ;;  %1360 = vmatpush3.bf16.msra.mxu0 %v1461_v58  ;;  %1403 = vmatpush3.bf16.msra.mxu1 %v1461_v58 }
  0x15   : > { %v243_v5 = vld [vmem:[%s1543_s19 + $0x8] sm:$0xe]  ;;  %v1554_v6 = vcombine.low %v227_v3, %v228_v4  ;;  %v224_v7 = vld [vmem:[%s1543_s19 + $0x4] sm:$0xf]  ;;  %v242_v10 = vld [vmem:[%s1543_s19] sm:$0xe]  ;;  %1361 = vmatprep.subr.bf16.mxu0 %v2289_v0  ;;  %1401 = vmatprep.subr.bf16.mxu1 %v2289_v0 }
  0x16   : > { %v225_v8 = vld [vmem:[%s1543_s19 + $0x8] sm:$0xf]  ;;  %v1284_v9 = vcombine.low %v243_v5, %v226_v2  ;;  %v223_v12 = vld [vmem:[%s1543_s19] sm:$0xf]  ;;  %v1283_v14 = vcombine.low %v242_v10, %v224_v7  ;;  %v249_v16 = vld [vmem:[%s1543_s19 + $0x10] sm:$0xc] }
  0x17   : > { %2303 = vst [vmem:[#allocation2_spill] sm:$0xff] %v1554_v6  ;;  %v1559_v11 = vcombine.low %v225_v8, %v226_v2  ;;  %v1565_v13 = vrot.slane %v1554_v6, 1  ;;  %v1567_v15 = vcombine.low %v223_v12, %v224_v7  ;;  %v1571_v17 = vld [vmem:[%s1543_s19 + $0x18] sm:$0xff]   ;;  %v1289_v20 = vcombine.low %v249_v16, %v228_v4  ;;  %v248_v21 = vld [vmem:[%s1543_s19 + $0x8] sm:$0xc]  ;;  %v1614_v53 = vld [vmem:[%s1543_s19 + $0x30] sm:$0xff]  }
  0x18   : > { %v450_v18 = vrot.slane %v1284_v9, 1  ;;  %v555_v22 = vrot.slane %v1554_v6, 2  ;;  %v402_v23 = vrot.slane %v1283_v14, 1  ;;  %v1577_v24 = vrot.slane %v1571_v17, 2  ;;  %v254_v26 = vld [vmem:[%s1543_s19 + $0x10] sm:$0x8] }
  0x19   : > { %2304 = vst [vmem:[#allocation3_spill] sm:$0xff] %v1559_v11  ;;  %2305 = vst [vmem:[#allocation4_spill] sm:$0xff] %v1567_v15  ;;  %v403_v19 = vrot.slane %v1559_v11, 1  ;;  %v1288_v25 = vcombine.low %v248_v21, %v226_v2  ;;  %v2293_v27 = vrot.slane %v1571_v17, 3  ;;  %v602_v29 = vrot.slane %v1289_v20, 2  ;;  %v1599_v44 = vld [vmem:[%s1543_s19 + $0x28] sm:$0xff]  }
  0x1a   : > { %v451_v28 = vsel %vm401_vm0, %v450_v18, %v1565_v13  ;;  %v1293_v30 = vcombine.low %v254_v26, %v228_v4  ;;  %v305_v31 = vshrl.u32 %v1567_v15, 16  ;;  %v307_v34 = vshll.u32 %v1567_v15, 16  ;;  %v1644_v12 = vld [vmem:[%s1543_s19 + $0x38] sm:$0xff]   ;;  %s1497_s4 = smov 28   ;;  %s1406_s9 = smul.u32 72, %s2342_s12 }
  0x1b   : > { %456 = vrot.lane.b32.xlu1 %v451_v28, %s1490_s22  ;;  %v404_v32 = vsel %vm401_vm0, %v402_v23, %v403_v19  ;;  %v554_v33 = vrot.slane %v1288_v25, 2  ;;  %v312_v35 = vshll.u32 %v1559_v11, 16  ;;  %v603_v36 = vsel %vm553_vm1, %v602_v29, %v1577_v24 }
  0x1c   : > { %421 = vrot.lane.b32.xlu0 %v404_v32, %s1491_s23  ;;  %v706_v37 = vrot.slane %v1293_v30, 3  ;;  %v320_v38 = vshll.u32 %v1554_v6, 16  ;;  %v2292_v39 = vshrl.u32 %v1554_v6, 16  ;;  %v309_v41 = vrot.slane %v307_v34, 1  ;;  %v1674_v32 = vld [vmem:[%s1543_s19 + $0x40] sm:$0xff]   ;;  %s2218_s16 = scalar_lea.vmem %s2284_s3, %s1406_s9 }
  0x1d   : > { %v556_v40 = vsel %vm553_vm1, %v554_v33, %v555_v22  ;;  %v314_v42 = vrot.slane %v312_v35, 1  ;;  %v479_v43 = vshrl.u32 %v1284_v9, 16  ;;  %v482_v46 = vshll.u32 %v1284_v9, 16  ;;  %2306 = vst [vmem:[#allocation5_spill] sm:$0xff] %v1674_v32 }
  0x1e   : > { %v708_v45 = vsel %vm705_vm2, %v706_v37, %v2293_v27  ;;  %v486_v47 = vrot.slane %v2292_v39, 1  ;;  %v487_v48 = vrot.slane %v320_v38, 2  ;;  %v310_v49 = vor.u32 %v309_v41, %v305_v31 }
  0x1f   : > { %608 = vrot.lane.b32.xlu1 %v603_v36, %s1492_s24  ;;  %v481_v50 = vrot.slane %v479_v43, 1  ;;  %v1608_v51 = vshll.u32 %v1571_v17, 16  ;;  %v1611_v52 = vshrl.u32 %v1571_v17, 16  ;;  %v484_v54 = vrot.slane %v482_v46, 2 }
  0x20   : > { %573 = vrot.lane.b32.xlu0 %v556_v40, %s1493_s25  ;;  %v1617_v55 = vor.u32 %v487_v48, %v486_v47  ;;  %v631_v56 = vshrl.u32 %v1289_v20, 16  ;;  %v634_v57 = vshll.u32 %v1289_v20, 16  ;;  %v315_v59 = vsel %vm303_vm3, %v310_v49, %v314_v42 }
  0x21   : > { %v638_v60 = vrot.slane %v1611_v52, 2  ;;  %v639_v61 = vrot.slane %v1608_v51, 3  ;;  %v1626_v62 = vshll.u32 %v1599_v44, 16  ;;  %v485_v63 = vor.u32 %v484_v54, %v481_v50 }
  0x22   : > { %v633_v1 = vrot.slane %v631_v56, 2  ;;  %v636_v2 = vrot.slane %v634_v57, 3  ;;  %v1629_v3 = vshrl.u32 %v1599_v44, 16  ;;  %v1636_v7 = vshll.u32 %v1614_v53, 16 }
  0x23   : > { %725 = vrot.lane.b32.xlu1 %v708_v45, %s1494_s28  ;;  %v1632_v4 = vor.u32 %v639_v61, %v638_v60  ;;  %v2291_v5 = vrot.slane %v1626_v62, 1  ;;  %v316_v8 = vshrl.u32 %v1559_v11, 16  ;;  %v489_v9 = vsel %vm477_vm4, %v485_v63, %v1617_v55 }
  0x24   : > { %380 = vrot.lane.b32.xlu0 %v315_v59, %s1495_s29  ;;  %v637_v10 = vor.u32 %v636_v2, %v633_v1  ;;  %v354_v16 = vrot.slane %v1636_v7, 1  ;;  %v1651_v20 = vrot.slane %v320_v38, 1  ;;  %v411_v23 = vrot.slane %v1599_v44, 1  ;;  %v1683_v38 = vld [vmem:[%s1543_s19 + $0x20] sm:$0xff]  }
  0x25   : > { %v350_v14 = vor.u32 %v1629_v3, %v2291_v5  ;;  %v318_v18 = vor.u32 %v316_v8, %v314_v42  ;;  %v413_v25 = vrot.slane %v1614_v53, 1  ;;  %v1659_v26 = vshrl.u32 %v1614_v53, 16 }
  0x26   : > { %v641_v21 = vsel %vm629_vm5, %v637_v10, %v1632_v4  ;;  %v1666_v29 = vshll.u32 %v1644_v12, 16  ;;  %v1669_v30 = vshrl.u32 %v1644_v12, 16  ;;  %v2287_v33 = vrot.slane %v1644_v12, 1 }
  0x27   : > { %532 = vrot.lane.b32.xlu1 %v489_v9, %s1496_s30  ;;  %v355_v28 = vsel %vm303_vm3, %v350_v14, %v354_v16  ;;  %v323_v31 = vsel %vm303_vm3, %v318_v18, %v1651_v20  ;;  %v502_v34 = vrot.slane %v1659_v26, 1  ;;  %v503_v35 = vrot.slane %v1636_v7, 2  ;;  %v1745_v18 = vld [vmem:[%s1543_s19 + $0x48] sm:$0xff]  }
  0x28   : > { %684 = vrot.lane.b32.xlu0 %v641_v21, %s1497_s4  ;;  %v490_v36 = vrot.slane %v1611_v52, 1  ;;  %v491_v37 = vrot.slane %v1608_v51, 2  ;;  %v1689_v40 = vsel %vm401_vm0, %v411_v23, %v413_v25  ;;  %v506_v41 = vrot.slane %v1669_v30, 1 }
  0x29   : > { %2307 = vst [vmem:[#allocation6_spill] sm:$0xff] %v1689_v40  ;;  %v507_v42 = vrot.slane %v1666_v29, 2  ;;  %v406_v43 = vsel %vm401_vm0, %v403_v19, %v1565_v13  ;;  %v2286_v45 = vrot.slane %v1571_v17, 1  ;;  %v1699_v46 = vshll.u32 %v1674_v32, 16 }
  0x2a   : > { %v1702_v47 = vshrl.u32 %v1674_v32, 16  ;;  %v1707_v48 = vsel %vm401_vm0, %v413_v25, %v2287_v33  ;;  %v1709_v49 = vor.u32 %v503_v35, %v502_v34  ;;  %v563_v50 = vrot.slane %v1614_v53, 2 }
  0x2b   : > { %390 = vrot.lane.b32.xlu1 %v355_v28, %s1495_s29  ;;  %v565_v54 = vrot.slane %v1644_v12, 2  ;;  %v1715_v19 = vor.u32 %v491_v37, %v490_v36  ;;  %v567_v56 = vrot.slane %v1674_v32, 2  ;;  %v1719_v57 = vshll.u32 %v1683_v38, 16  ;;  %v1835_v36 = vld [vmem:[%s1543_s19 + $0x50] sm:$0xff]  }
  0x2c   : > { %382 = vrot.lane.b32.xlu0 %v323_v31, %s1495_s29  ;;  %v1722_v58 = vshrl.u32 %v1683_v38, 16  ;;  %v1725_v59 = vor.u32 %v507_v42, %v506_v41  ;;  %v2285_v60 = vrot.slane %v1683_v38, 2  ;;  %v654_v61 = vrot.slane %v1669_v30, 2 }
  0x2d   : > { %v655_v63 = vrot.slane %v1666_v29, 3  ;;  %v1734_v1 = vsel %vm401_vm0, %v1565_v13, %v2286_v45  ;;  %v658_v2 = vrot.slane %v1702_v47, 2  ;;  %v659_v8 = vrot.slane %v1699_v46, 3 }
  0x2e   : > { %v558_v9 = vsel %vm553_vm1, %v555_v22, %v1577_v24  ;;  %v642_v10 = vrot.slane %v1722_v58, 2  ;;  %v643_v14 = vrot.slane %v1719_v57, 3  ;;  %v493_v13 = vsel %vm477_vm4, %v1617_v55, %v1715_v19 }
  0x2f   : > { %431 = vrot.lane.b32.xlu1 %v1689_v40, %s1491_s23  ;;  %v1755_v21 = vsel %vm553_vm1, %v563_v50, %v565_v54  ;;  %v2288_v22 = vrot.slane %v1644_v12, 3  ;;  %v717_v25 = vrot.slane %v1674_v32, 3  ;;  %v509_v28 = vsel %vm477_vm4, %v1709_v49, %v1725_v59  ;;  %v1458_v40 = vld [vmem:[%s1543_s19 + $0x50] ss:$0 sps:$4 sm:$0x11]  }
  0x30   : > { %423 = vrot.lane.b32.xlu0 %v406_v43, %s1491_s23  ;;  %2308 = vst [vmem:[#allocation7_spill] sm:$0xff] %v1755_v21  ;;  %v1765_v31 = vsel %vm553_vm1, %v565_v54, %v567_v56  ;;  %v1771_v55 = vsel %vm553_vm1, %v1577_v24, %v2285_v60  ;;  %v1773_v34 = vor.u32 %v655_v63, %v654_v61  ;;  %v510_v43 = vrot.slane %v1702_v47, 1 }
  0x31   : > { %v1775_v35 = vor.u32 %v659_v8, %v658_v2  ;;  %v1781_v37 = vor.u32 %v1659_v26, %v354_v16  ;;  %v1784_v42 = vor.u32 %v643_v14, %v642_v10  ;;  %v511_v24 = vrot.slane %v1699_v46, 2 }
  0x32   : > { %v1789_v54 = vrot.slane %v1745_v18, 2  ;;  %v1795_v61 = vsel %vm705_vm2, %v2288_v22, %v717_v25  ;;  %v494_v16 = vrot.slane %v1722_v58, 1  ;;  %v495_v63 = vrot.slane %v1719_v57, 2 }
  0x33   : > { %466 = vrot.lane.b32.xlu1 %v1707_v48, %s1490_s22  ;;  %v515_v2 = vshrl.u32 %v1745_v18, 16  ;;  %v518_v10 = vshll.u32 %v1745_v18, 16  ;;  %v646_v14 = vrot.slane %v1629_v3, 2  ;;  %v661_v60 = vsel %vm629_vm5, %v1773_v34, %v1775_v35 }
  0x34   : > { %458 = vrot.lane.b32.xlu0 %v1734_v1, %s1490_s22  ;;  %v1803_v8 = vsel %vm553_vm1, %v567_v56, %v1789_v54  ;;  %v2295_v45 = vrot.slane %v1608_v51, 1  ;;  %v1813_v33 = vrot.slane %v1674_v32, 1  ;;  %v645_v56 = vsel %vm629_vm5, %v1632_v4, %v1784_v42 }
  0x35   : > { %v2294_v22 = vrot.slane %v1683_v38, 1  ;;  %v1820_v0 = vor.u32 %v511_v24, %v510_v43  ;;  %v1825_v5 = vor.u32 %v495_v63, %v494_v16  ;;  %v338_v4 = vrot.slane %v1719_v57, 1 }
  0x36   : > { %v334_v27 = vor.u32 %v1611_v52, %v2295_v45  ;;  %v662_v43 = vrot.slane %v515_v2, 2  ;;  %v663_v24 = vrot.slane %v518_v10, 3  ;;  %v452_v16 = vrot.slane %v1745_v18, 1 }
  0x37   : > { %542 = vrot.lane.b32.xlu1 %v509_v28, %s1496_s30  ;;  %v647_v28 = vrot.slane %v1626_v62, 3  ;;  %v1850_v52 = vsel %vm401_vm0, %v2294_v22, %v411_v23  ;;  %v517_v57 = vrot.slane %v515_v2, 1  ;;  %v2309_v23 = vrot.slane %v1599_v44, 2 }
  0x38   : > { %534 = vrot.lane.b32.xlu0 %v493_v13, %s1496_s30  ;;  %v719_v13 = vrot.slane %v1745_v18, 3  ;;  %v1843_v63 = vsel %vm303_vm3, %v334_v27, %v338_v4  ;;  %v498_v18 = vrot.slane %v1629_v3, 1  ;;  %v667_v22 = vshrl.u32 %v1835_v36, 16  ;;  %v1457_v3 = vld [vmem:[%s1543_s19 + $0x48] ss:$0 sps:$4 sm:$0x11]  }
  0x39   : > { %v1838_v41 = vor.u32 %v647_v28, %v646_v14  ;;  %v520_v14 = vrot.slane %v518_v10, 2  ;;  %v499_v28 = vrot.slane %v1626_v62, 2  ;;  %v1866_v2 = vsel %vm553_vm1, %v2309_v23, %v563_v50 }
  0x3a   : > { %v1828_v39 = vsel %vm705_vm2, %v717_v25, %v719_v13  ;;  %2310 = vst [vmem:[#allocation8_spill] sm:$0xff] %v1866_v2  ;;  %v670_v10 = vshll.u32 %v1835_v36, 16  ;;  %v650_v27 = vrot.slane %v1659_v26, 2  ;;  %v651_v32 = vrot.slane %v1636_v7, 3 }
  0x3b   : > { %583 = vrot.lane.b32.xlu1 %v1755_v21, %s1493_s25  ;;  %v521_v45 = vor.u32 %v520_v14, %v517_v57  ;;  %v500_v25 = vor.u32 %v499_v28, %v498_v18  ;;  %v2311_v11 = vrot.slane %v1835_v36, 2  ;;  %v669_v23 = vrot.slane %v667_v22, 2  ;;  %v1460_v14 = vld [vmem:[%s1543_s19 + $0x50] ss:$0 sps:$4 sm:$0x33]  }
  0x3c   : > { %575 = vrot.lane.b32.xlu0 %v558_v9, %s1493_s25  ;;  %v1854_v9 = vsel %vm401_vm0, %v1813_v33, %v452_v16  ;;  %v672_v21 = vrot.slane %v670_v10, 3  ;;  %v721_v15 = vrot.slane %v1835_v36, 3  ;;  %v1883_v2 = vor.u32 %v663_v24, %v662_v43 }
  0x3d   : > { %v1879_v50 = vsel %vm553_vm1, %v1789_v54, %v2311_v11  ;;  %v1887_v57 = vsel %vm477_vm4, %v1820_v0, %v521_v45  ;;  %v1891_v7 = vsel %vm477_vm4, %v1825_v5, %v500_v25  ;;  %v652_v26 = vor.u32 %v651_v32, %v650_v27 }
  0x3e   : > { %v673_v11 = vor.u32 %v672_v21, %v669_v23  ;;  %v1896_v22 = vsel %vm705_vm2, %v719_v13, %v721_v15  ;;  %v2312_v43 = vrot.slane %v1699_v46, 1  ;;  %v376_v18 = vshll.u32 %v1457_v3, 16 }
  0x3f   : > { %618 = vrot.lane.b32.xlu1 %v1765_v31, %s1492_s24  ;;  %v2313_v28 = vrot.slane %v1683_v38, 3  ;;  %v2314_v10 = vrot.slane %v1571_v17, 3  ;;  %v342_v21 = vor.u32 %v1722_v58, %v338_v4  ;;  %v419_v13 = vrot.slane %v1457_v3, 1  ;;  %v1463_v3 = vld [vmem:[%s1543_s19 + $0x58] ss:$0 sps:$4 sm:$0x33]  }
  0x40   : > { %610 = vrot.lane.b32.xlu0 %v1771_v55, %s1492_s24  ;;  %v374_v24 = vor.u32 %v1702_v47, %v2312_v43  ;;  %v2315_v27 = vshrl.u32 %v1554_v6, 16  ;;  %v378_v23 = vrot.slane %v376_v18, 1  ;;  %v454_v43 = vrot.slane %v1458_v40, 1 }
  0x41   : > { %v710_v32 = vsel %vm705_vm2, %v2314_v10, %v2313_v28  ;;  %v2316_v28 = vrot.slane %v1626_v62, 1  ;;  %v1926_v58 = vsel %vm401_vm0, %v1813_v33, %v419_v13  ;;  %v524_v4 = vshrl.u32 %v1460_v14, 16 }
  0x42   : > { %v326_v47 = vor.u32 %v2315_v27, %v1651_v20  ;;  %v1932_v20 = vsel %vm303_vm3, %v374_v24, %v378_v23  ;;  %v1935_v18 = vsel %vm401_vm0, %v452_v16, %v454_v43  ;;  %v527_v40 = vshll.u32 %v1460_v14, 16  ;;  %v1464_v27 = vld [vmem:[%s1543_s19 + $0x58] ss:$0 sps:$4 sm:$0x77]  }
  0x43   : > { %694 = vrot.lane.b32.xlu1 %v661_v60, %s1497_s4  ;;  %v1909_v60 = vsel %vm629_vm5, %v1838_v41, %v652_v26  ;;  %v1922_v10 = vsel %vm303_vm3, %v342_v21, %v2316_v28  ;;  %v1939_v62 = vsel %vm477_vm4, %v500_v25, %v1709_v49  ;;  %v1462_v21 = vld [vmem:[%s2282_s1 + $0x10] ss:$0 sps:$4 sm:$0x33]   ;;  %v2317_v13 = vrot.slane %v1666_v29, 1 }
  0x44   : > { %686 = vrot.lane.b32.xlu0 %v645_v56, %s1497_s4  ;;  %v1917_v56 = vsel %vm629_vm5, %v1883_v2, %v673_v11  ;;  %v526_v24 = vrot.slane %v524_v4, 1  ;;  %v2318_v16 = vrot.slane %v1608_v51, 1  ;;  %v529_v43 = vrot.slane %v527_v40, 2 }
  0x45   : > { %v571_v49 = vrot.slane %v1460_v14, 2  ;;  %v606_v25 = vrot.slane %v1463_v3, 2  ;;  %v713_v28 = vrot.slane %v1614_v53, 3  ;;  %v2319_v4 = vmov 0.0  }
  0x46   : > { %v331_v23 = vsel %vm303_vm3, %v326_v47, %v2318_v16  ;;  %1363 = vmatprep.mubr.msk.bf16.mxu0 %vm1498_vm7, %v2319_v4  ;;  %v2320_v51 = vrot.slane %v1835_v36, 2  ;;  %v676_v47 = vshrl.u32 %v1464_v27, 16  ;;  %v679_v3 = vshll.u32 %v1464_v27, 16  ;;  %1383 = vmatprep.mubr.msk.bf16.mxu1 %vm1498_vm7, %v2319_v4 }
  0x47   : > { %735 = vrot.lane.b32.xlu1 %v1795_v61, %s1494_s28  ;;  %v363_v61 = vsel %vm303_vm3, %v1781_v37, %v2317_v13  ;;  %v1957_v6 = vsel %vm553_vm1, %v1789_v54, %v571_v49  ;;  %v943_v37 = vsel %vm941_vm6, %v1462_v21, 0  ;;  %v1969_v40 = vsel %vm629_vm5, %v652_v26, %v1773_v34 }
  0x48   : > { %727 = vrot.lane.b32.xlu0 %v710_v32, %s1494_s28  ;;  %v530_v32 = vor.u32 %v529_v43, %v526_v24  ;;  %1362 = vmatpush3.bf16.msra.mxu0 %v943_v37  ;;  %v1965_v14 = vsel %vm553_vm1, %v2320_v51, %v606_v25  ;;  %v723_v21 = vrot.slane %v1464_v27, 3  ;;  %v2321_v13 = vrot.slane %v1644_v12, 3 }
  0x49   : > { %1404 = vmatpush3.bf16.msra.mxu1 %v943_v37  ;;  %v678_v36 = vrot.slane %v676_v47, 2  ;;  %v681_v24 = vrot.slane %v679_v3, 3  ;;  %v2323_v16 = vrot.slane %v1683_v38, 1  ;;  %v2328_v49 = vrot.slane %v1683_v38, 3 }
  0x4a   : > { %v1972_v54 = vsel %vm477_vm4, %v521_v45, %v530_v32  ;;  %v1984_v34 = vsel %vm705_vm2, %v721_v15, %v723_v21  ;;  %v2322_v45 = vrot.slane %v1644_v12, 1  ;;  %v513_v15 = vsel %vm477_vm4, %v1725_v59, %v1820_v0 }
  0x4b   : > { %392 = vrot.lane.b32.xlu1 %v363_v61, %s1495_s29  ;;  %v1977_v61 = vsel %vm705_vm2, %v713_v28, %v2321_v13  ;;  %v682_v27 = vor.u32 %v681_v24, %v678_v36  ;;  %v711_v59 = vrot.slane %v1599_v44, 3 }
  0x4c   : > { %384 = vrot.lane.b32.xlu0 %v331_v23, %s1495_s29  ;;  %v418_v26 = vsel %vm401_vm0, %v2322_v45, %v1813_v33  ;;  %v2324_v23 = vrot.slane %v1571_v17, 1  ;;  %v497_v33 = vsel %vm477_vm4, %v1715_v19, %v1825_v5  ;;  %v665_v5 = vsel %vm629_vm5, %v1775_v35, %v1883_v2  ;;  %v2334_v45 = vld [vmem:[#allocation3_spill] sm:$0xff] }
  0x4d   : > { %v649_v19 = vsel %vm629_vm5, %v1784_v42, %v1838_v41  ;;  %v712_v25 = vsel %vm705_vm2, %v2328_v49, %v711_v59  ;;  %v2329_v35 = vrot.slane %v1699_v46, 1 }
  0x4e   : > { %v410_v43 = vsel %vm401_vm0, %v2324_v23, %v2323_v16  ;;  %vm922_vm0 = vcmask 293888  }
  0x4f   : > { %433 = vrot.lane.b32.xlu1 %v1707_v48, %s1491_s23  ;;  %v1998_v48 = vsel %vm629_vm5, %v673_v11, %v682_v27  ;;  %v2326_v11 = vrot.slane %v1683_v38, 2 }
  0x50   : > { %425 = vrot.lane.b32.xlu0 %v1734_v1, %s1491_s23  ;;  %v2325_v1 = vrot.slane %v1599_v44, 2 }
  0x52   : > { %v562_v0 = vsel %vm553_vm1, %v2326_v11, %v2325_v1  ;;  %vm1140_vm1 = vcmask 60416  }
  0x53   : > { %468 = vrot.lane.b32.xlu1 %v418_v26, %s1490_s22 }
  0x54   : > { %460 = vrot.lane.b32.xlu0 %v410_v43, %s1490_s22 }
  0x57   : > { %544 = vrot.lane.b32.xlu1 %v513_v15, %s1496_s30 }
  0x58   : > { %536 = vrot.lane.b32.xlu0 %v497_v33, %s1496_s30 }
  0x5b   : > { %585 = vrot.lane.b32.xlu1 %v1765_v31, %s1493_s25  ;;  %v2327_v31 = vrot.slane %v1666_v29, 1  ;;  %v714_v29 = vsel %vm705_vm2, %v711_v59, %v713_v28 }
  0x5c   : > { %577 = vrot.lane.b32.xlu0 %v1771_v55, %s1493_s25 }
  0x5d   : > { %v366_v55 = vor.u32 %v1669_v30, %v2327_v31 }
  0x5f   : > { %620 = vrot.lane.b32.xlu1 %v1803_v8, %s1492_s24  ;;  %v371_v41 = vsel %vm303_vm3, %v366_v55, %v2329_v35 }
  0x60   : > { %612 = vrot.lane.b32.xlu0 %v562_v0, %s1492_s24 }
  0x63   : > { %696 = vrot.lane.b32.xlu1 %v665_v5, %s1497_s4 }
  0x64   : > { %688 = vrot.lane.b32.xlu0 %v649_v19, %s1497_s4 }
  0x67   : > { %737 = vrot.lane.b32.xlu1 %v1828_v39, %s1494_s28  ;;  %v2330_v39 = vld [vmem:[#allocation8_spill] sm:$0xff] }
  0x68   : > { %729 = vrot.lane.b32.xlu0 %v712_v25, %s1494_s28 }
  0x6b   : > { %394 = vrot.lane.b32.xlu1 %v371_v41, %s1495_s29 }
  0x6c   : > { %386 = vrot.lane.b32.xlu0 %v1843_v63, %s1495_s29  ;;  %v2331_v63 = vld [vmem:[#allocation6_spill] sm:$0xff] }
  0x6f   : > { %435 = vrot.lane.b32.xlu1 %v418_v26, %s1491_s23 }
  0x70   : > { %427 = vrot.lane.b32.xlu0 %v410_v43, %s1491_s23 }
  0x73   : > { %470 = vrot.lane.b32.xlu1 %v1854_v9, %s1490_s22 }
  0x74   : > { %462 = vrot.lane.b32.xlu0 %v1850_v52, %s1490_s22 }
  0x77   : > { %546 = vrot.lane.b32.xlu1 %v1887_v57, %s1496_s30 }
  0x78   : > { %538 = vrot.lane.b32.xlu0 %v1891_v7, %s1496_s30 }
  0x7b   : > { %587 = vrot.lane.b32.xlu1 %v1803_v8, %s1493_s25 }
  0x7c   : > { %579 = vrot.lane.b32.xlu0 %v562_v0, %s1493_s25 }
  0x7f   : > { %622 = vrot.lane.b32.xlu1 %v1879_v50, %s1492_s24  ;;  %v2332_v50 = vld [vmem:[#allocation4_spill] sm:$0xff] }
  0x80   : > { %614 = vrot.lane.b32.xlu0 %v2330_v39, %s1492_s24 }
  0x83   : > { %698 = vrot.lane.b32.xlu1 %v1917_v56, %s1497_s4 }
  0x84   : > { %690 = vrot.lane.b32.xlu0 %v1909_v60, %s1497_s4 }
  0x87   : > { %739 = vrot.lane.b32.xlu1 %v1896_v22, %s1494_s28 }
  0x88   : > { %731 = vrot.lane.b32.xlu0 %v714_v29, %s1494_s28 }
  0x8b   : > { %396 = vrot.lane.b32.xlu1 %v1932_v20, %s1495_s29 }
  0x8c   : > { %388 = vrot.lane.b32.xlu0 %v1922_v10, %s1495_s29 }
  0x8d   : > { %v457_v30 = vpop.permute.xlu1 %456 }
  0x8e   : > { %v422_v46 = vpop.permute.xlu0 %421 }
  0x8f   : > { %437 = vrot.lane.b32.xlu1 %v1926_v58, %s1491_s23 }
  0x90   : > { %429 = vrot.lane.b32.xlu0 %v1850_v52, %s1491_s23 }
  0x91   : > { %v609_v42 = vpop.permute.xlu1 %608 }
  0x92   : > { %v574_v8 = vpop.permute.xlu0 %573 }
  0x93   : > { %472 = vrot.lane.b32.xlu1 %v1935_v18, %s1490_s22 }
  0x94   : > { %464 = vrot.lane.b32.xlu0 %v2331_v63, %s1490_s22 }
  0x95   : > { %v726_v9 = vpop.permute.xlu1 %725 }
  0x96   : > { %v381_v2 = vpop.permute.xlu0 %380 }
  0x97   : > { %v745_v57 = vsel %vm743_vm8, %v2332_v50, %v381_v2  ;;  %548 = vrot.lane.b32.xlu1 %v1972_v54, %s1496_s30  ;;  %v2335_v2 = vld [vmem:[#allocation2_spill] sm:$0xff] }
  0x98   : > { %v764_v52 = vsel %vm762_vm9, %v745_v57, %v422_v46  ;;  %540 = vrot.lane.b32.xlu0 %v1939_v62, %s1496_s30 }
  0x99   : > { %v533_v7 = vpop.permute.xlu1 %532  ;;  %v783_v22 = vsel %vm781_vm10, %v764_v52, %v457_v30 }
  0x9a   : > { %v802_v60 = vsel %vm800_vm11, %v783_v22, %v533_v7  ;;  %v685_v56 = vpop.permute.xlu0 %684 }
  0x9b   : > { %v821_v10 = vsel %vm819_vm12, %v802_v60, %v574_v8  ;;  %589 = vrot.lane.b32.xlu1 %v1957_v6, %s1493_s25  ;;  %v2333_v6 = vld [vmem:[#allocation7_spill] sm:$0xff] }
  0x9c   : > { %v840_v58 = vsel %vm838_vm13, %v821_v10, %v609_v42  ;;  %581 = vrot.lane.b32.xlu0 %v2330_v39, %s1493_s25 }
  0x9d   : > { %v859_v20 = vsel %vm857_vm14, %v840_v58, %v685_v56  ;;  %v391_v18 = vpop.permute.xlu1 %390 }
  0x9e   : > { %v383_v62 = vpop.permute.xlu0 %382  ;;  %v878_v28 = vsel %vm876_vm15, %v859_v20, %v726_v9  ;;  %v755_v24 = vsel %vm743_vm8, %v1599_v44, %v391_v18 }
  0x9f   : > { %624 = vrot.lane.b32.xlu1 %v1965_v14, %s1492_s24  ;;  %1364 = vmatmul.mubr.msk.bf16.vlgmr.msra.gmra.mrb[0].mxu0 %vm922_vm0, %v878_v28 }
  0xa0   : > { %616 = vrot.lane.b32.xlu0 %v2333_v6, %s1492_s24  ;;  %1367 = vmatprep.mubr.msk.bf16.mxu0 %vm1498_vm7, %v2319_v4 }
  0xa1   : > { %v432_v32 = vpop.permute.xlu1 %431 }
  0xa2   : > { %v424_v37 = vpop.permute.xlu0 %423  ;;  %v774_v26 = vsel %vm762_vm9, %v755_v24, %v432_v32 }
  0xa3   : > { %700 = vrot.lane.b32.xlu1 %v1998_v48, %s1497_s4 }
  0xa4   : > { %692 = vrot.lane.b32.xlu0 %v1969_v40, %s1497_s4  ;;  %v747_v40 = vsel %vm743_vm8, %v2334_v45, %v383_v62 }
  0xa5   : > { %v467_v51 = vpop.permute.xlu1 %466  ;;  %v766_v27 = vsel %vm762_vm9, %v747_v40, %v424_v37 }
  0xa6   : > { %v459_v47 = vpop.permute.xlu0 %458 }
  0xa7   : > { %741 = vrot.lane.b32.xlu1 %v1984_v34, %s1494_s28  ;;  %v793_v34 = vsel %vm781_vm10, %v774_v26, %v467_v51 }
  0xa8   : > { %733 = vrot.lane.b32.xlu0 %v1977_v61, %s1494_s28  ;;  %v785_v61 = vsel %vm781_vm10, %v766_v27, %v459_v47 }
  0xa9   : > { %v543_v14 = vpop.permute.xlu1 %542 }
  0xaa   : > { %v535_v3 = vpop.permute.xlu0 %534  ;;  %v812_v23 = vsel %vm800_vm11, %v793_v34, %v543_v14 }
  0xab   : > { %v804_v48 = vsel %vm800_vm11, %v785_v61, %v535_v3 }
  0xad   : > { %v584_v54 = vpop.permute.xlu1 %583 }
  0xae   : > { %v576_v21 = vpop.permute.xlu0 %575  ;;  %v831_v15 = vsel %vm819_vm12, %v812_v23, %v584_v54 }
  0xaf   : > { %v823_v44 = vsel %vm819_vm12, %v804_v48, %v576_v21 }
  0xb1   : > { %v619_v13 = vpop.permute.xlu1 %618 }
  0xb2   : > { %v611_v36 = vpop.permute.xlu0 %610  ;;  %v850_v33 = vsel %vm838_vm13, %v831_v15, %v619_v13 }
  0xb3   : > { %v842_v1 = vsel %vm838_vm13, %v823_v44, %v611_v36 }
  0xb5   : > { %v695_v16 = vpop.permute.xlu1 %694 }
  0xb6   : > { %v687_v43 = vpop.permute.xlu0 %686  ;;  %v869_v11 = vsel %vm857_vm14, %v850_v33, %v695_v16 }
  0xb7   : > { %v861_v5 = vsel %vm857_vm14, %v842_v1, %v687_v43 }
  0xb9   : > { %v736_v0 = vpop.permute.xlu1 %735 }
  0xba   : > { %v888_v19 = vsel %vm876_vm15, %v869_v11, %v736_v0  ;;  %v728_v59 = vpop.permute.xlu0 %727 }
  0xbb   : > { %v880_v31 = vsel %vm876_vm15, %v861_v5, %v728_v59  ;;  %1384 = vmatmul.mubr.msk.bf16.vlgmr.msra.gmra.mrb[0].mxu1 %vm922_vm0, %v888_v19 }
  0xbc   : > { %1368 = vmatmul.mubr.msk.bf16.gmra.mrb[4].mxu0 %vm922_vm0, %v880_v31  ;;  %1387 = vmatprep.mubr.msk.bf16.mxu1 %vm1498_vm7, %v2319_v4 }
  0xbd   : > { %v393_v55 = vpop.permute.xlu1 %392  ;;  %1371 = vmatprep.mubr.msk.bf16.mxu0 %vm1498_vm7, %v2319_v4 }
  0xbe   : > { %v385_v49 = vpop.permute.xlu0 %384  ;;  %v757_v9 = vsel %vm743_vm8, %v1614_v53, %v393_v55 }
  0xbf   : > { %v749_v50 = vsel %vm743_vm8, %v2335_v2, %v385_v49 }
  0xc1   : > { %v434_v25 = vpop.permute.xlu1 %433 }
  0xc2   : > { %v426_v35 = vpop.permute.xlu0 %425  ;;  %v776_v57 = vsel %vm762_vm9, %v757_v9, %v434_v25 }
  0xc3   : > { %v768_v52 = vsel %vm762_vm9, %v749_v50, %v426_v35 }
  0xc5   : > { %v469_v41 = vpop.permute.xlu1 %468 }
  0xc6   : > { %v461_v39 = vpop.permute.xlu0 %460  ;;  %v795_v7 = vsel %vm781_vm10, %v776_v57, %v469_v41  ;;  %v2336_v57 = vld [vmem:[#allocation5_spill] sm:$0xff] }
  0xc7   : > { %v787_v60 = vsel %vm781_vm10, %v768_v52, %v461_v39 }
  0xc9   : > { %v545_v29 = vpop.permute.xlu1 %544 }
  0xca   : > { %v537_v30 = vpop.permute.xlu0 %536  ;;  %v814_v56 = vsel %vm800_vm11, %v795_v7, %v545_v29 }
  0xcb   : > { %v806_v58 = vsel %vm800_vm11, %v787_v60, %v537_v30 }
  0xcd   : > { %v586_v46 = vpop.permute.xlu1 %585 }
  0xce   : > { %v578_v42 = vpop.permute.xlu0 %577  ;;  %v833_v20 = vsel %vm819_vm12, %v814_v56, %v586_v46 }
  0xcf   : > { %v825_v53 = vsel %vm819_vm12, %v806_v58, %v578_v42 }
  0xd1   : > { %v621_v8 = vpop.permute.xlu1 %620 }
  0xd2   : > { %v613_v63 = vpop.permute.xlu0 %612  ;;  %v852_v18 = vsel %vm838_vm13, %v833_v20, %v621_v8 }
  0xd3   : > { %v844_v62 = vsel %vm838_vm13, %v825_v53, %v613_v63 }
  0xd5   : > { %v697_v22 = vpop.permute.xlu1 %696 }
  0xd6   : > { %v689_v10 = vpop.permute.xlu0 %688  ;;  %v871_v28 = vsel %vm857_vm14, %v852_v18, %v697_v22 }
  0xd7   : > { %v863_v32 = vsel %vm857_vm14, %v844_v62, %v689_v10 }
  0xd9   : > { %v738_v6 = vpop.permute.xlu1 %737 }
  0xda   : > { %v890_v37 = vsel %vm876_vm15, %v871_v28, %v738_v6  ;;  %v730_v51 = vpop.permute.xlu0 %729 }
  0xdb   : > { %v882_v47 = vsel %vm876_vm15, %v863_v32, %v730_v51  ;;  %1388 = vmatmul.mubr.msk.bf16.gmra.mrb[4].mxu1 %vm922_vm0, %v890_v37 }
  0xdc   : > { %1372 = vmatmul.mubr.msk.bf16.gmra.mrb[8].mxu0 %vm922_vm0, %v882_v47  ;;  %1391 = vmatprep.mubr.msk.bf16.mxu1 %vm1498_vm7, %v2319_v4 }
  0xdd   : > { %v395_v14 = vpop.permute.xlu1 %394  ;;  %1375 = vmatprep.mubr.msk.bf16.mxu0 %vm1498_vm7, %v2319_v4 }
  0xde   : > { %v387_v3 = vpop.permute.xlu0 %386  ;;  %v759_v16 = vsel %vm743_vm8, %v1644_v12, %v395_v14 }
  0xdf   : > { %v751_v61 = vsel %vm743_vm8, %v1571_v17, %v387_v3  ;;  %v2210_v3 = vld [vmem:[%s2283_s2] ss:$0 sm:$0xff] }
  0xe1   : > { %v436_v54 = vpop.permute.xlu1 %435 }
  0xe2   : > { %v428_v21 = vpop.permute.xlu0 %427  ;;  %v778_v23 = vsel %vm762_vm9, %v759_v16, %v436_v54 }
  0xe3   : > { %v770_v43 = vsel %vm762_vm9, %v751_v61, %v428_v21 }
  0xe5   : > { %v471_v13 = vpop.permute.xlu1 %470 }
  0xe6   : > { %v463_v36 = vpop.permute.xlu0 %462  ;;  %v797_v48 = vsel %vm781_vm10, %v778_v23, %v471_v13 }
  0xe7   : > { %v789_v44 = vsel %vm781_vm10, %v770_v43, %v463_v36 }
  0xe9   : > { %v547_v24 = vpop.permute.xlu1 %546 }
  0xea   : > { %v539_v45 = vpop.permute.xlu0 %538  ;;  %v816_v33 = vsel %vm800_vm11, %v797_v48, %v547_v24 }
  0xeb   : > { %v808_v11 = vsel %vm800_vm11, %v789_v44, %v539_v45 }
  0xed   : > { %v588_v40 = vpop.permute.xlu1 %587 }
  0xee   : > { %v580_v26 = vpop.permute.xlu0 %579  ;;  %v835_v0 = vsel %vm819_vm12, %v816_v33, %v588_v40 }
  0xef   : > { %v827_v12 = vsel %vm819_vm12, %v808_v11, %v580_v26 }
  0xf1   : > { %v623_v27 = vpop.permute.xlu1 %622 }
  0xf2   : > { %v615_v34 = vpop.permute.xlu0 %614  ;;  %v854_v17 = vsel %vm838_vm13, %v835_v0, %v623_v27 }
  0xf3   : > { %v846_v5 = vsel %vm838_vm13, %v827_v12, %v615_v34 }
  0xf5   : > { %v699_v15 = vpop.permute.xlu1 %698 }
  0xf6   : > { %v691_v1 = vpop.permute.xlu0 %690  ;;  %v873_v19 = vsel %vm857_vm14, %v854_v17, %v699_v15 }
  0xf7   : > { %v865_v31 = vsel %vm857_vm14, %v846_v5, %v691_v1 }
  0xf9   : > { %v740_v59 = vpop.permute.xlu1 %739 }
  0xfa   : > { %v892_v55 = vsel %vm876_vm15, %v873_v19, %v740_v59  ;;  %v732_v49 = vpop.permute.xlu0 %731 }
  0xfb   : > { %v884_v25 = vsel %vm876_vm15, %v865_v31, %v732_v49  ;;  %1392 = vmatmul.mubr.msk.bf16.gmra.mrb[8].mxu1 %vm922_vm0, %v892_v55 }
  0xfc   : > { %1376 = vmatmul.mubr.msk.bf16.gmra.mrb[12].mxu0 %vm922_vm0, %v884_v25  ;;  %1395 = vmatprep.mubr.msk.bf16.mxu1 %vm1498_vm7, %v2319_v4 }
  0xfd   : > { %v397_v35 = vpop.permute.xlu1 %396  ;;  %1379 = vmatprep.mubr.msk.bf16.mxu0 %vm1498_vm7, %v2319_v4 }
  0xfe   : > { %v389_v41 = vpop.permute.xlu0 %388  ;;  %v761_v52 = vsel %vm743_vm8, %v2336_v57, %v397_v35 }
  0xff   : > { %v753_v7 = vsel %vm743_vm8, %v1683_v38, %v389_v41 }
 0x101   : > { %v438_v39 = vpop.permute.xlu1 %437 }
 0x102   : > { %v430_v29 = vpop.permute.xlu0 %429  ;;  %v780_v22 = vsel %vm762_vm9, %v761_v52, %v438_v39 }
 0x103   : > { %v772_v4 = vsel %vm762_vm9, %v753_v7, %v430_v29 }
 0x105   : > { %v473_v30 = vpop.permute.xlu1 %472 }
 0x106   : > { %v465_v46 = vpop.permute.xlu0 %464  ;;  %v799_v60 = vsel %vm781_vm10, %v780_v22, %v473_v30 }
 0x107   : > { %v791_v10 = vsel %vm781_vm10, %v772_v4, %v465_v46 }
 0x109   : > { %v549_v42 = vpop.permute.xlu1 %548 }
 0x10a   : > { %v541_v8 = vpop.permute.xlu0 %540  ;;  %v818_v58 = vsel %vm800_vm11, %v799_v60, %v549_v42 }
 0x10b   : > { %v810_v53 = vsel %vm800_vm11, %v791_v10, %v541_v8 }
 0x10d   : > { %v590_v63 = vpop.permute.xlu1 %589 }
 0x10e   : > { %v582_v9 = vpop.permute.xlu0 %581  ;;  %v837_v18 = vsel %vm819_vm12, %v818_v58, %v590_v63 }
 0x10f   : > { %v829_v62 = vsel %vm819_vm12, %v810_v53, %v582_v9 }
 0x111   : > { %v625_v2 = vpop.permute.xlu1 %624 }
 0x112   : > { %v617_v50 = vpop.permute.xlu0 %616  ;;  %v856_v38 = vsel %vm838_vm13, %v837_v18, %v625_v2 }
 0x113   : > { %v848_v28 = vsel %vm838_vm13, %v829_v62, %v617_v50 }
 0x115   : > { %v701_v56 = vpop.permute.xlu1 %700 }
 0x116   : > { %v693_v20 = vpop.permute.xlu0 %692  ;;  %v875_v6 = vsel %vm857_vm14, %v856_v38, %v701_v56 }
 0x117   : > { %v867_v37 = vsel %vm857_vm14, %v848_v28, %v693_v20 }
 0x119   : > { %v742_v32 = vpop.permute.xlu1 %741 }
 0x11a   : > { %v894_v51 = vsel %vm876_vm15, %v875_v6, %v742_v32  ;;  %v734_v47 = vpop.permute.xlu0 %733 }
 0x11b   : > { %v886_v14 = vsel %vm876_vm15, %v867_v37, %v734_v47  ;;  %1396 = vmatmul.mubr.msk.bf16.gmra.mrb[12].mxu1 %vm922_vm0, %v894_v51 }
 0x11c   : > { %1380 = vmatmul.mubr.msk.bf16.gmra.mrb[16].mxu0 %vm922_vm0, %v886_v14 }
 0x172   : > { %v979_v54 = vpop.f32.mrb[0].mxu0 }
 0x173   : > { %v980_v21 = vadd.f32 %v2210_v3, %v979_v54  ;;  %v1365_v13 = vpop.f32.mrb[1].mxu0 }
 0x174   : > { %v982_v36 = vpop.f32.mrb[2].mxu0 }
 0x175   : > { %v1050_v24 = vmax.f32 %v980_v21, 0.0  ;;  %v983_v45 = vadd.f32 %v2210_v3, %v982_v36  ;;  %v1366_v40 = vpop.f32.mrb[3].mxu0 }
 0x177   : > { %v1327_v26 = vpack.c.bf16 %v1050_v24, %v1050_v24  ;;  %v1051_v27 = vmax.f32 %v983_v45, 0.0 }
 0x179   : > { %1141 = vst.msk [vmem:[%s2218_s16] sm:$0xf] %vm1140_vm1, %v1327_v26  ;;  %v1328_v34 = vpack.c.bf16 %v1051_v27, %v1051_v27 }
 0x17b   : > { %1142 = vst.msk [vmem:[%s2218_s16 + $0x4] sm:$0xf] %vm1140_vm1, %v1328_v34 }
 0x18e   : > { %v1019_v16 = vpop.f32.mrb[0].mxu1 }
 0x18f   : > { %v987_v61 = vpop.f32.mrb[4].mxu0  ;;  %v1020_v23 = vadd.f32 %v2210_v3, %v1019_v16  ;;  %v1385_v43 = vpop.f32.mrb[1].mxu1 }
 0x190   : > { %v988_v48 = vadd.f32 %v2210_v3, %v987_v61  ;;  %v1369_v15 = vpop.f32.mrb[5].mxu0  ;;  %v1022_v44 = vpop.f32.mrb[2].mxu1 }
 0x191   : > { %v1060_v33 = vmax.f32 %v1020_v23, 0.0  ;;  %v990_v1 = vpop.f32.mrb[6].mxu0  ;;  %v1023_v11 = vadd.f32 %v2210_v3, %v1022_v44  ;;  %v1386_v0 = vpop.f32.mrb[3].mxu1 }
 0x192   : > { %v1052_v12 = vmax.f32 %v988_v48, 0.0  ;;  %v991_v17 = vadd.f32 %v2210_v3, %v990_v1  ;;  %v1370_v5 = vpop.f32.mrb[7].mxu0 }
 0x193   : > { %v1337_v19 = vpack.c.bf16 %v1060_v33, %v1060_v33  ;;  %v1061_v59 = vmax.f32 %v1023_v11, 0.0 }
 0x194   : > { %v1329_v31 = vpack.c.bf16 %v1052_v12, %v1052_v12  ;;  %v1053_v55 = vmax.f32 %v991_v17, 0.0 }
 0x195   : > { %1151 = vst.msk [vmem:[%s2218_s16 + $0x28] sm:$0xf] %vm1140_vm1, %v1337_v19  ;;  %v1338_v49 = vpack.c.bf16 %v1061_v59, %v1061_v59 }
 0x196   : > { %1143 = vst.msk [vmem:[%s2218_s16 + $0x8] sm:$0xf] %vm1140_vm1, %v1329_v31  ;;  %v1330_v25 = vpack.c.bf16 %v1053_v55, %v1053_v55 }
 0x197   : > { %1152 = vst.msk [vmem:[%s2218_s16 + $0x2c] sm:$0xf] %vm1140_vm1, %v1338_v49 }
 0x198   : > { %1144 = vst.msk [vmem:[%s2218_s16 + $0xc] sm:$0xf] %vm1140_vm1, %v1330_v25 }
 0x1ae   : > { %v1027_v35 = vpop.f32.mrb[4].mxu1 }
 0x1af   : > { %v995_v41 = vpop.f32.mrb[8].mxu0  ;;  %v1028_v39 = vadd.f32 %v2210_v3, %v1027_v35  ;;  %v1389_v29 = vpop.f32.mrb[5].mxu1 }
 0x1b0   : > { %v996_v30 = vadd.f32 %v2210_v3, %v995_v41  ;;  %v1373_v46 = vpop.f32.mrb[9].mxu0  ;;  %v1030_v42 = vpop.f32.mrb[6].mxu1 }
 0x1b1   : > { %v1062_v8 = vmax.f32 %v1028_v39, 0.0  ;;  %v998_v63 = vpop.f32.mrb[10].mxu0  ;;  %v1031_v9 = vadd.f32 %v2210_v3, %v1030_v42  ;;  %v1390_v2 = vpop.f32.mrb[7].mxu1 }
 0x1b2   : > { %v1054_v50 = vmax.f32 %v996_v30, 0.0  ;;  %v999_v57 = vadd.f32 %v2210_v3, %v998_v63  ;;  %v1374_v52 = vpop.f32.mrb[11].mxu0 }
 0x1b3   : > { %v1339_v7 = vpack.c.bf16 %v1062_v8, %v1062_v8  ;;  %v1063_v22 = vmax.f32 %v1031_v9, 0.0 }
 0x1b4   : > { %v1331_v4 = vpack.c.bf16 %v1054_v50, %v1054_v50  ;;  %v1055_v60 = vmax.f32 %v999_v57, 0.0 }
 0x1b5   : > { %1153 = vst.msk [vmem:[%s2218_s16 + $0x30] sm:$0xf] %vm1140_vm1, %v1339_v7  ;;  %v1340_v56 = vpack.c.bf16 %v1063_v22, %v1063_v22 }
 0x1b6   : > { %1145 = vst.msk [vmem:[%s2218_s16 + $0x10] sm:$0xf] %vm1140_vm1, %v1331_v4  ;;  %v1332_v10 = vpack.c.bf16 %v1055_v60, %v1055_v60 }
 0x1b7   : > { %1154 = vst.msk [vmem:[%s2218_s16 + $0x34] sm:$0xf] %vm1140_vm1, %v1340_v56 }
 0x1b8   : > { %1146 = vst.msk [vmem:[%s2218_s16 + $0x14] sm:$0xf] %vm1140_vm1, %v1332_v10 }
 0x1ce   : > { %v1035_v58 = vpop.f32.mrb[8].mxu1 }
 0x1cf   : > { %v1003_v20 = vpop.f32.mrb[12].mxu0  ;;  %v1036_v53 = vadd.f32 %v2210_v3, %v1035_v58  ;;  %v1393_v18 = vpop.f32.mrb[9].mxu1 }
 0x1d0   : > { %v1004_v62 = vadd.f32 %v2210_v3, %v1003_v20  ;;  %v1377_v38 = vpop.f32.mrb[13].mxu0  ;;  %v1038_v28 = vpop.f32.mrb[10].mxu1 }
 0x1d1   : > { %v1064_v6 = vmax.f32 %v1036_v53, 0.0  ;;  %v1006_v32 = vpop.f32.mrb[14].mxu0  ;;  %v1039_v37 = vadd.f32 %v2210_v3, %v1038_v28  ;;  %v1394_v51 = vpop.f32.mrb[11].mxu1 }
 0x1d2   : > { %v1056_v47 = vmax.f32 %v1004_v62, 0.0  ;;  %v1007_v14 = vadd.f32 %v2210_v3, %v1006_v32  ;;  %v1378_v54 = vpop.f32.mrb[15].mxu0 }
 0x1d3   : > { %v1341_v21 = vpack.c.bf16 %v1064_v6, %v1064_v6  ;;  %v1065_v13 = vmax.f32 %v1039_v37, 0.0 }
 0x1d4   : > { %v1333_v36 = vpack.c.bf16 %v1056_v47, %v1056_v47  ;;  %v1057_v24 = vmax.f32 %v1007_v14, 0.0 }
 0x1d5   : > { %1155 = vst.msk [vmem:[%s2218_s16 + $0x38] sm:$0xf] %vm1140_vm1, %v1341_v21  ;;  %v1342_v45 = vpack.c.bf16 %v1065_v13, %v1065_v13 }
 0x1d6   : > { %1147 = vst.msk [vmem:[%s2218_s16 + $0x18] sm:$0xf] %vm1140_vm1, %v1333_v36  ;;  %v1334_v40 = vpack.c.bf16 %v1057_v24, %v1057_v24 }
 0x1d7   : > { %1156 = vst.msk [vmem:[%s2218_s16 + $0x3c] sm:$0xf] %vm1140_vm1, %v1342_v45 }
 0x1d8   : > { %1148 = vst.msk [vmem:[%s2218_s16 + $0x1c] sm:$0xf] %vm1140_vm1, %v1334_v40 }
 0x1ee   : > { %v1043_v26 = vpop.f32.mrb[12].mxu1 }
 0x1ef   : > { %v1011_v27 = vpop.f32.mrb[16].mxu0  ;;  %v1044_v34 = vadd.f32 %v2210_v3, %v1043_v26  ;;  %v1397_v16 = vpop.f32.mrb[13].mxu1 }
 0x1f0   : > { %v1012_v61 = vadd.f32 %v2210_v3, %v1011_v27  ;;  %v1381_v23 = vpop.f32.mrb[17].mxu0  ;;  %v1046_v43 = vpop.f32.mrb[14].mxu1 }
 0x1f1   : > { %v1066_v48 = vmax.f32 %v1044_v34, 0.0  ;;  %v1014_v15 = vpop.f32.mrb[18].mxu0  ;;  %v1047_v44 = vadd.f32 %v2210_v3, %v1046_v43  ;;  %v1398_v33 = vpop.f32.mrb[15].mxu1 }
 0x1f2   : > { %v1058_v1 = vmax.f32 %v1012_v61, 0.0  ;;  %v1015_v11 = vadd.f32 %v2210_v3, %v1014_v15  ;;  %v1382_v0 = vpop.f32.mrb[19].mxu0 }
 0x1f3   : > { %v1343_v12 = vpack.c.bf16 %v1066_v48, %v1066_v48  ;;  %v1067_v17 = vmax.f32 %v1047_v44, 0.0 }
 0x1f4   : > { %v1335_v5 = vpack.c.bf16 %v1058_v1, %v1058_v1  ;;  %v1059_v19 = vmax.f32 %v1015_v11, 0.0 }
 0x1f5   : > { %1157 = vst.msk [vmem:[%s2218_s16 + $0x40] sm:$0xf] %vm1140_vm1, %v1343_v12  ;;  %v1344_v59 = vpack.c.bf16 %v1067_v17, %v1067_v17 }
 0x1f6   : > { %1149 = vst.msk [vmem:[%s2218_s16 + $0x20] sm:$0xf] %vm1140_vm1, %v1335_v5  ;;  %v1336_v31 = vpack.c.bf16 %v1059_v19, %v1059_v19 }
 0x1f7   : > { %1158 = vst.msk [vmem:[%s2218_s16 + $0x44] sm:$0xf] %vm1140_vm1, %v1344_v59 }
 0x1f8   : > { %1150 = vst.msk [vmem:[%s2218_s16 + $0x24] sm:$0xf] %vm1140_vm1, %v1336_v31 }
 0x1f9 PF: > { %s13_s14 = sadd.s32 1, %s1487_s14   ;;  %s2337_s12 = smov %s1483_s13 }
 0x1fa   : > { %p10_p5 = scmp.ge.s32.totalorder %s13_s14, 6   ;;  %s2338_s13 = smov %s2340_s15 }
 0x1fc   :  { %12 = sbr.rel (!%p10_p5) target bundleno = 2 (0x2), region = 68 }

// kernel: _lambda_.3
= control target key start
LH: loop header
LB: loop body
LE: loop exit
PB: predicated region body
PF: predicated region fallthrough
CT: control target
= control target key end

     0   :  { %s1865_s18 = smov 0   ;;  %s1867_s19 = smov 0   ;;  %s2716_s0 = inlined_call_operand.vmem [shape: bf16[4,182,8], index: 0, kind: input, shape index: {}]   ;;  %s2717_s1 = inlined_call_operand.vmem [shape: bf16[72,8], index: 1, kind: input, shape index: {}]   ;;  %s2718_s2 = inlined_call_operand.vmem [shape: bf16[4,144,4], index: 2, kind: input, shape index: {}]   ;;  %s2719_s3 = inlined_call_operand.vmem [shape: bf16[4,8], index: 3, kind: input, shape index: {}]   ;;  %s2720_s4 = inlined_call_operand.vmem [shape: f32[1,8], index: 4, kind: input, shape index: {}]   ;;  %s2721_s5 = inlined_call_operand.vmem [shape: f32[4,144,8], index: 5, kind: output, shape index: {}]  }
   0x1   :  { %s1869_s20 = smov 0  }
   0x2 LB: > { %s27_s21 = sadd.s32 1, %s1819_s19  ;;  %p1551_p0 = scmp.ge.s32.totalorder %s1823_s20, 1  ;;  %s1823_s20 = sphi %s1869_s20, %s15_s20   ;;  %s1819_s19 = sphi %s1867_s19, %s2775_s19   ;;  %s1815_s18 = sphi %s1865_s18, %s2774_s18  }
   0x3   : > { %p29_p1 = scmp.ge.s32.totalorder %s27_s21, 4  ;;  %p237_p2 = scmp.lt.s32.totalorder %s1823_s20, 5 }
   0x5   : > { %s2777_s21 = smov (%p29_p1, %s27_s21), 0  ;;  %p238_p3 = pnand %p1551_p0, %p237_p2 }
   0x7   : > { %241 = sbr.rel (%p238_p3) target bundleno = 504 (0x1f8), region = 40 }
   0xe   : > { %p284_p4 = scmp.lt.s32.totalorder %s1815_s18, 3  ;;  %v2730_v0 = vmov 0.0   ;;  %v1889_v1 = vld [vmem:[%s2717_s1] sm:$0xff]   ;;  %vm492_vm0 = vcmask 1046528   ;;  %vm644_vm1 = vcmask 1045504   ;;  %v1903_v2 = vld [vmem:[%s2717_s1 + $0x8] sm:$0xff]  }
   0xf   : > { %1719 = vmatprep.subr.bf16.mxu1 %v2730_v0  ;;  %1635 = vmatprep.subr.bf16.mxu0 %v2730_v0  ;;  %vm796_vm2 = vcmask 1044480   ;;  %vm394_vm3 = vsmask.f32 7424  ;;  %s1826_s30 = smov 24   ;;  %s1827_s6 = smov 16   ;;  %v1995_v43 = vld [vmem:[%s2717_s1 + $0x10] sm:$0xff]  }
  0x10   : > { %s2779_s18 = smov (!%p284_p4, %s1815_s18), 3  ;;  %1724 = vmatpush3.bf16.msra.mxu1 %v1889_v1  ;;  %s1828_s7 = smov 48   ;;  %vm720_vm4 = vsmask.f32 5376  ;;  %vm568_vm5 = vsmask.f32 6400 }
  0x11   : > { %s1729_s24 = smul.u32 92, %s2779_s18  ;;  %1720 = vmatprep.subr.bf16.mxu1 %v2730_v0  ;;  %s1829_s8 = smov 40   ;;  %v2021_v55 = vld [vmem:[%s2717_s1 + $0x18] sm:$0xff]   ;;  %vm1087_vm6 = vcmask 1041408   ;;  %vm1834_vm7 = vmmov 0   ;;  %vm1059_vm8 = vcmask 31744  }
  0x12   : > { %s1830_s11 = smov 64   ;;  %s1730_s12 = smul.u32 72, %s2779_s18  ;;  %vm1242_vm9 = vcmask 1043456   ;;  %vm834_vm10 = vcmask 64512   ;;  %vm853_vm11 = vcmask 130048   ;;  %vm872_vm12 = vcmask 195584  }
  0x13   : > { %s1897_s27 = scalar_lea.vmem %s2716_s0, %s1729_s24  ;;  %s1831_s13 = smov 8   ;;  %vm891_vm13 = vcmask 261120   ;;  %vm910_vm14 = vcmask 326656   ;;  %vm929_vm15 = vcmask 392192  }
  0x14   : > { %v318_v3 = vld [vmem:[%s1897_s27 + $0x10] sm:$0xf]  ;;  %v1907_v4 = vld [vmem:[%s1897_s27 + $0x14] sm:$0xf]  ;;  %v1913_v6 = vld [vmem:[%s1897_s27 + $0x18] sm:$0xff]   ;;  %1725 = vmatpush3.bf16.msra.mxu1 %v1903_v2  ;;  %s2035_s22 = scalar_lea.vmem %s2718_s2, %s1730_s12  ;;  %s1832_s23 = smov 56  }
  0x15   : > { %v1910_v5 = vcombine.low %v318_v3, %v1907_v4  ;;  %v316_v7 = vld [vmem:[%s1897_s27 + $0x8] sm:$0xf]  ;;  %v1917_v8 = vld [vmem:[%s1897_s27 + $0xc] sm:$0xf]  ;;  %v498_v10 = vrot.slane %v1913_v6, 1  ;;  %v1928_v12 = vld [vmem:[%s1897_s27 + $0x20] sm:$0xff]   ;;  %1721 = vmatprep.subr.bf16.mxu1 %v2730_v0 }
  0x16   : > { %v1925_v11 = vcombine.low %v316_v7, %v1917_v8  ;;  %2740 = vst [vmem:[#allocation3_spill] sm:$0xff] %v1928_v12  ;;  %v1931_v13 = vrot.slane %v1913_v6, 2  ;;  %v650_v18 = vrot.slane %v1928_v12, 2  ;;  %v1943_v19 = vshll.u32 %v1913_v6, 16  ;;  %v2009_v51 = vld [vmem:[%s1897_s27 + $0x28] sm:$0xff]   ;;  %v2040_v60 = vld [vmem:[%s1897_s27 + $0x30] sm:$0xff]  }
  0x17   : > { %v1921_v9 = vrot.slane %v1910_v5, 1  ;;  %v2729_v14 = vrot.slane %v1910_v5, 2  ;;  %v411_v15 = vshll.u32 %v1910_v5, 16  ;;  %v2724_v20 = vrot.slane %v1913_v6, 3  ;;  %s1833_s24 = smov 32  }
  0x18   : > { %2739 = vst [vmem:[#allocation2_spill] sm:$0xff] %v1925_v11  ;;  %v2734_v17 = vrot.slane %v1925_v11, 1  ;;  %v800_v21 = vrot.slane %v1928_v12, 3  ;;  %v403_v22 = vshll.u32 %v1925_v11, 16  ;;  %v407_v23 = vshrl.u32 %v1925_v11, 16  ;;  %1726 = vmatpush3.bf16.msra.mxu1 %v1995_v43 }
  0x19   : > { %v499_v16 = vsel %vm492_vm0, %v1921_v9, %v498_v10  ;;  %v1958_v25 = vsel %vm644_vm1, %v1931_v13, %v650_v18  ;;  %v1961_v26 = vshrl.u32 %v1913_v6, 16  ;;  %v649_v27 = vsel %vm644_vm1, %v2729_v14, %v1931_v13  ;;  %1722 = vmatprep.subr.bf16.mxu1 %v2730_v0 }
  0x1a   : > { %549 = vrot.lane.b32.xlu1 %v499_v16, %s1826_s30  ;;  %v497_v24 = vsel %vm492_vm0, %v2734_v17, %v1921_v9  ;;  %v1968_v28 = vrot.slane %v403_v22, 1  ;;  %v1971_v29 = vshll.u32 %v1928_v12, 16  ;;  %v1974_v30 = vshrl.u32 %v1928_v12, 16  ;;  %v2053_v22 = vld [vmem:[%s1897_s27 + $0x40] sm:$0xff]  }
  0x1b   : > { %514 = vrot.lane.b32.xlu0 %v497_v24, %s1827_s6  ;;  %v413_v31 = vrot.slane %v411_v15, 1  ;;  %v729_v32 = vrot.slane %v1961_v26, 2  ;;  %v730_v33 = vrot.slane %v1943_v19, 3  ;;  %v415_v34 = vshrl.u32 %v1910_v5, 16 }
  0x1c   : > { %v801_v35 = vsel %vm796_vm2, %v2724_v20, %v800_v21  ;;  %v409_v36 = vor.u32 %v407_v23, %v1968_v28  ;;  %v733_v37 = vrot.slane %v1974_v30, 2  ;;  %v734_v38 = vrot.slane %v1971_v29, 3  ;;  %1727 = vmatpush3.bf16.msra.mxu1 %v2021_v55 }
  0x1d   : > { %v577_v39 = vrot.slane %v415_v34, 1  ;;  %v578_v40 = vrot.slane %v411_v15, 2  ;;  %v581_v41 = vrot.slane %v1961_v26, 1  ;;  %v582_v42 = vrot.slane %v1943_v19, 2  ;;  %1723 = vmatprep.subr.bf16.mxu1 %v2730_v0 }
  0x1e   : > { %701 = vrot.lane.b32.xlu1 %v1958_v25, %s1828_s7  ;;  %v414_v44 = vsel %vm394_vm3, %v409_v36, %v413_v31  ;;  %v1998_v45 = vor.u32 %v730_v33, %v729_v32  ;;  %v2000_v46 = vor.u32 %v734_v38, %v733_v37  ;;  %v585_v49 = vrot.slane %v1974_v30, 1 }
  0x1f   : > { %666 = vrot.lane.b32.xlu0 %v649_v27, %s1829_s8  ;;  %v2004_v47 = vor.u32 %v578_v40, %v577_v39  ;;  %v583_v48 = vor.u32 %v582_v42, %v581_v41  ;;  %v586_v50 = vrot.slane %v1971_v29, 2  ;;  %v417_v53 = vor.u32 %v415_v34, %v413_v31 }
  0x20   : > { %v736_v52 = vsel %vm720_vm4, %v1998_v45, %v2000_v46  ;;  %v421_v54 = vrot.slane %v1943_v19, 1  ;;  %v2027_v58 = vshll.u32 %v2009_v51, 16  ;;  %v2030_v59 = vshrl.u32 %v2009_v51, 16 }
  0x21   : > { %v584_v56 = vsel %vm568_vm5, %v2004_v47, %v583_v48  ;;  %v587_v57 = vor.u32 %v586_v50, %v585_v49  ;;  %v500_v62 = vrot.slane %v1928_v12, 1  ;;  %v652_v63 = vrot.slane %v2009_v51, 2  ;;  %v315_v50 = vld [vmem:[%s1897_s27 + $0x4] sm:$0xf] }
  0x22   : > { %818 = vrot.lane.b32.xlu1 %v801_v35, %s1830_s11  ;;  %v422_v61 = vsel %vm394_vm3, %v417_v53, %v421_v54  ;;  %v802_v3 = vrot.slane %v2009_v51, 3  ;;  %v737_v15 = vrot.slane %v2030_v59, 2  ;;  %v429_v19 = vrot.slane %v1971_v29, 1  ;;  %v1783_v12 = vld [vmem:[%s1897_s27 + $0x50] ss:$0 sps:$4 sm:$0x33]  }
  0x23   : > { %473 = vrot.lane.b32.xlu0 %v414_v44, %s1831_s13  ;;  %v588_v7 = vsel %vm568_vm5, %v583_v48, %v587_v57  ;;  %v589_v23 = vrot.slane %v2030_v59, 1  ;;  %v590_v24 = vrot.slane %v2027_v58, 2  ;;  %v2059_v27 = vshll.u32 %v2040_v60, 16 }
  0x24   : > { %v2062_v31 = vshrl.u32 %v2040_v60, 16  ;;  %v501_v32 = vsel %vm492_vm0, %v498_v10, %v500_v62  ;;  %v425_v29 = vor.u32 %v1961_v26, %v421_v54  ;;  %v2727_v33 = vrot.slane %v2009_v51, 1  ;;  %v2083_v26 = vld [vmem:[%s1897_s27 + $0x48] sm:$0xff]  }
  0x25   : > { %v2725_v34 = vrot.slane %v2040_v60, 2  ;;  %v2074_v35 = vsel %vm644_vm1, %v650_v18, %v652_v63  ;;  %v803_v36 = vsel %vm796_vm2, %v800_v21, %v802_v3  ;;  %v2723_v10 = vrot.slane %v2040_v60, 3 }
  0x26   : > { %516 = vrot.lane.b32.xlu1 %v499_v16, %s1827_s6  ;;  %v738_v16 = vrot.slane %v2027_v58, 3  ;;  %v741_v38 = vrot.slane %v2062_v31, 2  ;;  %v742_v39 = vrot.slane %v2059_v27, 3  ;;  %v2726_v18 = vrot.slane %v2027_v58, 1 }
  0x27   : > { %777 = vrot.lane.b32.xlu0 %v736_v52, %s1832_s23  ;;  %v2090_v40 = vshll.u32 %v2053_v22, 16  ;;  %v430_v21 = vsel %vm394_vm3, %v425_v29, %v429_v19  ;;  %v2093_v41 = vor.u32 %v590_v24, %v589_v23  ;;  %v463_v44 = vshrl.u32 %v2053_v22, 16 }
  0x28   : > { %v2079_v37 = vor.u32 %v738_v16, %v737_v15  ;;  %v2102_v48 = vsel %vm492_vm0, %v500_v62, %v2727_v33  ;;  %v2107_v49 = vsel %vm644_vm1, %v652_v63, %v2725_v34  ;;  %v2722_v52 = vrot.slane %v2053_v22, 2  ;;  %v2120_v62 = vld [vmem:[%s1897_s27 + $0x50] sm:$0xff]  }
  0x29   : > { %v2114_v53 = vsel %vm796_vm2, %v802_v3, %v2723_v10  ;;  %v433_v54 = vor.u32 %v1974_v30, %v429_v19  ;;  %v749_v63 = vrot.slane %v463_v44, 2  ;;  %v602_v15 = vrot.slane %v2090_v40, 2 }
  0x2a   : > { %625 = vrot.lane.b32.xlu1 %v584_v56, %s1833_s24  ;;  %v2728_v56 = vrot.slane %v2053_v22, 3  ;;  %v2126_v16 = vrot.slane %v2083_v26, 2  ;;  %v740_v30 = vsel %vm720_vm4, %v2000_v46, %v2079_v37  ;;  %v592_v3 = vsel %vm568_vm5, %v587_v57, %v2093_v41 }
  0x2b   : > { %475 = vrot.lane.b32.xlu0 %v422_v61, %s1831_s13  ;;  %v750_v61 = vrot.slane %v2090_v40, 3  ;;  %v810_v19 = vrot.slane %v2083_v26, 3  ;;  %v606_v23 = vshrl.u32 %v2083_v26, 16  ;;  %v609_v57 = vshll.u32 %v2083_v26, 16 }
  0x2c   : > { %v2143_v46 = vsel %vm644_vm1, %v2722_v52, %v2126_v16  ;;  %v2149_v29 = vsel %vm394_vm3, %v433_v54, %v2726_v18  ;;  %v1776_v54 = vld [vmem:[%s1897_s27 + $0x48] ss:$0 sps:$4 sm:$0x11]   ;;  %v314_v18 = vld [vmem:[%s1897_s27] sm:$0xf]  ;;  %v543_v24 = vrot.slane %v2083_v26, 1 }
  0x2d   : > { %v2160_v52 = vor.u32 %v750_v61, %v749_v63  ;;  %v754_v20 = vrot.slane %v609_v57, 3  ;;  %v608_v34 = vrot.slane %v606_v23, 1  ;;  %v611_v33 = vrot.slane %v609_v57, 2  ;;  %v333_v57 = vld [vmem:[%s1897_s27] sm:$0xe] }
  0x2e   : > { %627 = vrot.lane.b32.xlu1 %v588_v7, %s1833_s24  ;;  %v601_v7 = vrot.slane %v463_v44, 1  ;;  %v2733_v14 = vrot.slane %v2120_v62, 3  ;;  %v2736_v63 = vrot.slane %v2090_v40, 1  ;;  %v510_v17 = vrot.slane %v1776_v54, 1 }
  0x2f   : > { %551 = vrot.lane.b32.xlu0 %v501_v32, %s1826_s30 }
  0x30   : > { %v2162_v10 = vor.u32 %v602_v15, %v601_v7  ;;  %v758_v7 = vshrl.u32 %v2120_v62, 16  ;;  %v761_v15 = vshll.u32 %v2120_v62, 16  ;;  %v465_v0 = vor.u32 %v463_v44, %v2736_v63 }
  0x32   : > { %703 = vrot.lane.b32.xlu1 %v2074_v35, %s1828_s7  ;;  %v763_v42 = vrot.slane %v761_v15, 3 }
  0x33   : > { %668 = vrot.lane.b32.xlu0 %v1958_v25, %s1829_s8  ;;  %v2136_v25 = vor.u32 %v742_v39, %v741_v38  ;;  %v2157_v38 = vsel %vm796_vm2, %v2728_v56, %v810_v19  ;;  %v753_v39 = vrot.slane %v606_v23, 2  ;;  %v2732_v56 = vrot.slane %v2120_v62, 2 }
  0x34   : > { %v2175_v23 = vor.u32 %v611_v33, %v608_v34  ;;  %v760_v34 = vrot.slane %v758_v7, 2 }
  0x35   : > { %v755_v61 = vor.u32 %v754_v20, %v753_v39  ;;  %v2190_v20 = vsel %vm796_vm2, %v810_v19, %v2733_v14  ;;  %v334_v39 = vld [vmem:[%s1897_s27 + $0x8] sm:$0xe]  ;;  %v467_v19 = vshll.u32 %v1776_v54, 16  ;;  %v2206_v14 = vcombine.low %v314_v18, %v315_v50 }
  0x36   : > { %820 = vrot.lane.b32.xlu1 %v803_v36, %s1830_s11  ;;  %v2152_v36 = vrot.slane %v2053_v22, 1  ;;  %2742 = vst [vmem:[#allocation5_spill] sm:$0xff] %v2190_v20  ;;  %v1565_v20 = vcombine.low %v333_v57, %v315_v50  ;;  %v1566_v15 = vcombine.low %v334_v39, %v1917_v8  ;;  %v615_v39 = vshrl.u32 %v1783_v12, 16 }
  0x37   : > { %779 = vrot.lane.b32.xlu0 %v740_v30, %s1832_s23  ;;  %v1780_v30 = vld [vmem:[%s1897_s27 + $0x50] ss:$0 sps:$4 sm:$0x11]   ;;  %v2197_v33 = vsel %vm720_vm4, %v2160_v52, %v755_v61  ;;  %2743 = vst [vmem:[#allocation6_spill] sm:$0xff] %v2206_v14  ;;  %v469_v44 = vrot.slane %v467_v19, 1  ;;  %v396_v63 = vshrl.u32 %v2206_v14, 16 }
  0x38   : > { %v2179_v26 = vsel %vm492_vm0, %v2152_v36, %v543_v24  ;;  %v545_v7 = vrot.slane %v1780_v30, 1  ;;  %v2217_v18 = vsel %vm492_vm0, %v2152_v36, %v510_v17  ;;  %v493_v50 = vrot.slane %v1565_v20, 1  ;;  %v1785_v19 = vld [vmem:[%s2035_s22] sm:$0xff]  }
  0x39   : > { %2744 = vst [vmem:[#allocation7_spill] sm:$0xff] %v2217_v18  ;;  %v541_v54 = vrot.slane %v1566_v15, 1  ;;  %v744_v30 = vsel %vm720_vm4, %v2079_v37, %v2136_v25  ;;  %v2232_v17 = vsel %vm394_vm3, %v465_v0, %v469_v44  ;;  %v2746_v20 = vrot.slane %v1925_v11, 1  ;;  %v1788_v18 = vld [vmem:[%s1897_s27 + $0x58] ss:$0 sps:$4 sm:$0x33]  }
  0x3a   : > { %518 = vrot.lane.b32.xlu1 %v501_v32, %s1827_s6  ;;  %v2185_v32 = vsel %vm644_vm1, %v2126_v16, %v2732_v56  ;;  %v2204_v56 = vsel %vm568_vm5, %v2162_v10, %v2175_v23 }
  0x3b   : > { %2741 = vst [vmem:[#allocation4_spill] sm:$0xff] %v2185_v32  ;;  %477 = vrot.lane.b32.xlu0 %v430_v21, %s1831_s13  ;;  %v2210_v21 = vor.u32 %v763_v42, %v760_v34  ;;  %v398_v32 = vshll.u32 %v2206_v14, 16  ;;  %v2245_v37 = vsel %vm492_vm0, %v493_v50, %v2746_v20  ;;  %v2249_v0 = vsel %vm492_vm0, %v541_v54, %v1921_v9 }
  0x3c   : > { %2747 = vst [vmem:[#allocation9_spill] sm:$0xff] %v2245_v37  ;;  %v570_v34 = vshrl.u32 %v1566_v15, 16  ;;  %v617_v14 = vrot.slane %v615_v39, 1  ;;  %v340_v37 = vld [vmem:[%s1897_s27 + $0x10] sm:$0xc]  ;;  %v2750_v39 = vrot.slane %v2059_v27, 2 }
  0x3d   : > { %v2223_v42 = vsel %vm720_vm4, %v755_v61, %v2210_v21  ;;  %v400_v57 = vrot.slane %v398_v32, 1  ;;  %v1013_v61 = vld [vmem:[%s2719_s3] sm:$0x3]  ;;  %v618_v32 = vshll.u32 %v1783_v12, 16 }
  0x3e   : > { %629 = vrot.lane.b32.xlu1 %v592_v3, %s1833_s24  ;;  %v2226_v3 = vsel %vm492_vm0, %v543_v24, %v545_v7  ;;  %v2240_v24 = vld [vmem:[%s1897_s27 + $0x38] sm:$0xff]   ;;  %v339_v7 = vld [vmem:[%s1897_s27 + $0x8] sm:$0xc]  ;;  %v572_v50 = vrot.slane %v570_v34, 1  ;;  %v1089_v20 = vsel %vm1087_vm6, %v1013_v61, 0 }
  0x3f   : > { %553 = vrot.lane.b32.xlu0 %v2102_v48, %s1826_s30  ;;  %2745 = vst [vmem:[#allocation8_spill] sm:$0xff] %v2226_v3  ;;  %v401_v44 = vor.u32 %v400_v57, %v396_v63  ;;  %v573_v3 = vshll.u32 %v1566_v15, 16  ;;  %v620_v11 = vrot.slane %v618_v32, 2  ;;  %1636 = vmatpush3.bf16.msra.mxu0 %v1089_v20  ;;  %v2748_v63 = vmov 0.0   ;;  %v1790_v34 = vld [vmem:[%s2717_s1 + $0x20] ss:$0 sps:$4 sm:$0xff]  }
  0x40   : > { %1637 = vmatprep.mubr.msk.bf16.mxu0 %vm1834_vm7, %v2748_v63  ;;  %v662_v15 = vrot.slane %v1783_v12, 2  ;;  %v1792_v57 = vld [vmem:[%s1897_s27 + $0x58] ss:$0 sps:$4 sm:$0x77]   ;;  %v1570_v32 = vcombine.low %v339_v7, %v1917_v8  ;;  %1687 = vmatprep.mubr.msk.bf16.mxu1 %vm1834_vm7, %v2748_v63  ;;  %v2280_v12 = vshll.u32 %v2240_v24, 16  ;;  %v1571_v7 = vcombine.low %v340_v37, %v1907_v4 }
  0x41   : > { %v2259_v9 = vsel %vm394_vm3, %v401_v44, %v1968_v28  ;;  %v575_v54 = vrot.slane %v573_v3, 2  ;;  %v621_v3 = vor.u32 %v620_v11, %v617_v14  ;;  %1673 = vmatprep.subr.bf16.mxu0 %v2748_v63  ;;  %v697_v14 = vrot.slane %v1788_v18, 2 }
  0x42   : > { %705 = vrot.lane.b32.xlu1 %v2107_v49, %s1828_s7  ;;  %v2287_v20 = vsel %vm644_vm1, %v2126_v16, %v662_v15  ;;  %1638 = vmatmul.mubr.msk.bf16.vlgmr.msra.gmra.mrb[0].mxu0 %vm1059_vm8, %v1785_v19  ;;  %v645_v11 = vrot.slane %v1570_v32, 2  ;;  %v767_v16 = vshrl.u32 %v1792_v57, 16  ;;  %v693_v19 = vrot.slane %v1571_v7, 2  ;;  %v345_v15 = vld [vmem:[%s1897_s27 + $0x10] sm:$0x8]  ;;  %s1731_s27 = smul.u32 144, %s2779_s18 }
  0x43   : > { %670 = vrot.lane.b32.xlu0 %v2074_v35, %s1829_s8  ;;  %v2749_v35 = vrot.slane %v2062_v31, 1  ;;  %v576_v44 = vor.u32 %v575_v54, %v572_v50  ;;  %v2293_v8 = vsel %vm568_vm5, %v2175_v23, %v621_v3  ;;  %1641 = vmatprep.mubr.msk.bf16.mxu0 %vm1834_vm7, %v2748_v63  ;;  %v2751_v23 = vrot.slane %v1910_v5, 2 }
  0x44   : > { %1674 = vmatpush3.bf16.msra.mxu0 %v1889_v1  ;;  %v1244_v54 = vsel %vm1242_vm9, %v1790_v34, 0  ;;  %v769_v3 = vrot.slane %v767_v16, 2  ;;  %v814_v28 = vrot.slane %v1792_v57, 3  ;;  %s2642_s9 = scalar_lea.vmem %s2721_s5, %s1731_s27 }
  0x45   : > { %v2270_v61 = vor.u32 %v2750_v39, %v2749_v35  ;;  %v2299_v50 = vsel %vm568_vm5, %v576_v44, %v2004_v47  ;;  %v2309_v18 = vsel %vm644_vm1, %v645_v11, %v2751_v23  ;;  %v2752_v47 = vrot.slane %v2120_v62, 2  ;;  %1675 = vmatprep.subr.bf16.mxu0 %v2748_v63  ;;  %1728 = vmatpush3.bf16.msra.mxu1 %v1244_v54  ;;  %v1791_v11 = vld [vmem:[%s2035_s22 + $0x8] sm:$0xff]  }
  0x46   : > { %822 = vrot.lane.b32.xlu1 %v2114_v53, %s1830_s11  ;;  %v2283_v53 = vshrl.u32 %v2240_v24, 16  ;;  %v2754_v35 = vrot.slane %v2009_v51, 1  ;;  %v2331_v44 = vsel %vm644_vm1, %v693_v19, %v1931_v13  ;;  %v746_v23 = vrot.slane %v2280_v12, 3 }
  0x47   : > { %781 = vrot.lane.b32.xlu0 %v744_v30, %s1832_s23  ;;  %v770_v30 = vshll.u32 %v1792_v57, 16  ;;  %v2314_v37 = vsel %vm644_vm1, %v2752_v47, %v697_v14  ;;  %v596_v1 = vsel %vm568_vm5, %v2093_v41, %v2270_v61  ;;  %v722_v41 = vshrl.u32 %v1571_v7, 16 }
  0x48   : > { %v745_v34 = vrot.slane %v2283_v53, 2  ;;  %v725_v14 = vshll.u32 %v1571_v7, 16  ;;  %1676 = vmatpush3.bf16.msra.mxu0 %v1903_v2  ;;  %v2755_v13 = vrot.slane %v2240_v24, 2  ;;  %v2756_v7 = vrot.slane %v2040_v60, 2 }
  0x49   : > { %v772_v32 = vrot.slane %v770_v30, 3  ;;  %v724_v16 = vrot.slane %v722_v41, 2  ;;  %1677 = vmatprep.subr.bf16.mxu0 %v2748_v63  ;;  %v2757_v2 = vrot.slane %v2120_v62, 3 }
  0x4a   : > { %520 = vrot.lane.b32.xlu1 %v2102_v48, %s1827_s6  ;;  %v2753_v48 = vrot.slane %v2040_v60, 1  ;;  %v727_v30 = vrot.slane %v725_v14, 3  ;;  %v657_v19 = vsel %vm644_vm1, %v2756_v7, %v2755_v13  ;;  %1642 = vmatmul.mubr.msk.bf16.gmra.mrb[4].mxu0 %vm1059_vm8, %v1791_v11  ;;  %v598_v11 = vrot.slane %v2280_v12, 2 }
  0x4b   : > { %479 = vrot.lane.b32.xlu0 %v2149_v29, %s1831_s13  ;;  %v773_v47 = vor.u32 %v772_v32, %v769_v3  ;;  %v806_v29 = vrot.slane %v2240_v24, 3  ;;  %v2758_v3 = vrot.slane %v1913_v6, 3  ;;  %1645 = vmatprep.mubr.msk.bf16.mxu0 %vm1834_vm7, %v2748_v63 }
  0x4c   : > { %v505_v39 = vsel %vm492_vm0, %v2754_v35, %v2753_v48  ;;  %v1575_v48 = vcombine.low %v345_v15, %v1907_v4  ;;  %v2352_v4 = vsel %vm796_vm2, %v2757_v2, %v814_v28  ;;  %v747_v35 = vor.u32 %v746_v23, %v745_v34  ;;  %1678 = vmatpush3.bf16.msra.mxu0 %v1995_v43  ;;  %v1794_v43 = vld [vmem:[%s2035_s22 + $0x10] sm:$0xff]  }
  0x4d   : > { %v2347_v57 = vsel %vm720_vm4, %v2210_v21, %v773_v47  ;;  %1679 = vmatprep.subr.bf16.mxu0 %v2748_v63  ;;  %v2759_v21 = vrot.slane %v2040_v60, 3  ;;  %v597_v34 = vrot.slane %v2283_v53, 1  ;;  %v445_v23 = vrot.slane %v2059_v27, 1 }
  0x4e   : > { %631 = vrot.lane.b32.xlu1 %v596_v1, %s1833_s24  ;;  %v797_v15 = vrot.slane %v1575_v48, 3  ;;  %v728_v1 = vor.u32 %v727_v30, %v724_v16  ;;  %v748_v41 = vsel %vm720_vm4, %v2136_v25, %v747_v35  ;;  %v2761_v27 = vrot.slane %v2040_v60, 1  ;;  %v1796_v30 = vld [vmem:[%s2035_s22 + $0x20] sm:$0xff]  }
  0x4f   : > { %555 = vrot.lane.b32.xlu0 %v505_v39, %s1826_s30  ;;  %v807_v28 = vsel %vm796_vm2, %v2759_v21, %v806_v29  ;;  %v599_v47 = vor.u32 %v598_v11, %v597_v34  ;;  %v2762_v48 = vrot.slane %v2053_v22, 2  ;;  %v2763_v16 = vmov %v2755_v13  ;;  %v2771_v21 = vld [vmem:[#allocation2_spill] sm:$0xff] }
  0x50   : > { %v2359_v32 = vsel %vm796_vm2, %v797_v15, %v2758_v3  ;;  %v2367_v62 = vsel %vm720_vm4, %v728_v1, %v1998_v45  ;;  %v2760_v45 = vrot.slane %v2027_v58, 1  ;;  %1680 = vmatpush3.bf16.msra.mxu0 %v2021_v55  ;;  %v506_v58 = vrot.slane %v2240_v24, 1  ;;  %v1800_v1 = vld [vmem:[%s2035_s22 + $0x40] sm:$0xff]  }
  0x51   : > { %1681 = vmatprep.subr.bf16.mxu0 %v2748_v63  ;;  %v600_v55 = vsel %vm568_vm5, %v2270_v61, %v599_v47  ;;  %v2764_v61 = vrot.slane %v2053_v22, 3  ;;  %v752_v13 = vsel %vm720_vm4, %v747_v35, %v2160_v52  ;;  %v449_v7 = vor.u32 %v2062_v31, %v445_v23  ;;  %v1797_v31 = vld [vmem:[%s2035_s22 + $0x28] sm:$0xff]  }
  0x52   : > { %707 = vrot.lane.b32.xlu1 %v657_v19, %s1828_s7  ;;  %v441_v14 = vor.u32 %v2030_v59, %v2760_v45  ;;  %1646 = vmatmul.mubr.msk.bf16.gmra.mrb[8].mxu0 %vm1059_vm8, %v1794_v43  ;;  %v1795_v59 = vld [vmem:[%s2035_s22 + $0x18] sm:$0xff]   ;;  %v507_v25 = vsel %vm492_vm0, %v2761_v27, %v506_v58  ;;  %v453_v2 = vrot.slane %v2280_v12, 1  ;;  %v604_v52 = vsel %vm568_vm5, %v599_v47, %v2162_v10  ;;  %v1798_v10 = vld [vmem:[%s2035_s22 + $0x30] sm:$0xff]  }
  0x53   : > { %672 = vrot.lane.b32.xlu0 %v2107_v49, %s1829_s8  ;;  %1649 = vmatprep.mubr.msk.bf16.mxu0 %vm1834_vm7, %v2748_v63  ;;  %v509_v12 = vsel %vm492_vm0, %v506_v58, %v2152_v36  ;;  %v2765_v36 = vrot.slane %v2090_v40, 1  ;;  %v2766_v40 = vld [vmem:[#allocation4_spill] sm:$0xff]  ;;  %vm948_vm0 = vcmask 457728  }
  0x54   : > { %v446_v49 = vsel %vm394_vm3, %v441_v14, %v445_v23  ;;  %1682 = vmatpush3.bf16.msra.mxu0 %v1244_v54  ;;  %v659_v54 = vsel %vm644_vm1, %v2763_v16, %v2762_v48  ;;  %v454_v15 = vsel %vm394_vm3, %v449_v7, %v453_v2  ;;  %vm967_vm1 = vcmask 523264  }
  0x56   : > { %824 = vrot.lane.b32.xlu1 %v807_v28, %s1830_s11 }
  0x57   : > { %783 = vrot.lane.b32.xlu0 %v748_v41, %s1832_s23 }
  0x5a   : > { %522 = vrot.lane.b32.xlu1 %v505_v39, %s1827_s6  ;;  %1650 = vmatmul.mubr.msk.bf16.gmra.mrb[12].mxu0 %vm1059_vm8, %v1795_v59  ;;  %v809_v39 = vsel %vm796_vm2, %v806_v29, %v2764_v61  ;;  %v457_v29 = vor.u32 %v2283_v53, %v453_v2  ;;  %v1799_v53 = vld [vmem:[%s2035_s22 + $0x38] sm:$0xff]   ;;  %vm1223_vm2 = vcmask 588800  }
  0x5b   : > { %481 = vrot.lane.b32.xlu0 %v446_v49, %s1831_s13  ;;  %1653 = vmatprep.mubr.msk.bf16.mxu0 %vm1834_vm7, %v2748_v63 }
  0x5e   : > { %633 = vrot.lane.b32.xlu1 %v600_v55, %s1833_s24 }
  0x5f   : > { %557 = vrot.lane.b32.xlu0 %v507_v25, %s1826_s30 }
  0x62   : > { %709 = vrot.lane.b32.xlu1 %v659_v54, %s1828_s7  ;;  %1654 = vmatmul.mubr.msk.bf16.gmra.mrb[16].mxu0 %vm1059_vm8, %v1796_v30 }
  0x63   : > { %674 = vrot.lane.b32.xlu0 %v657_v19, %s1829_s8  ;;  %1657 = vmatprep.mubr.msk.bf16.mxu0 %vm1834_vm7, %v2748_v63  ;;  %v462_v19 = vsel %vm394_vm3, %v457_v29, %v2765_v36 }
  0x66   : > { %826 = vrot.lane.b32.xlu1 %v809_v39, %s1830_s11 }
  0x67   : > { %785 = vrot.lane.b32.xlu0 %v752_v13, %s1832_s23 }
  0x6a   : > { %524 = vrot.lane.b32.xlu1 %v507_v25, %s1827_s6  ;;  %1658 = vmatmul.mubr.msk.bf16.gmra.mrb[20].mxu0 %vm1059_vm8, %v1797_v31 }
  0x6b   : > { %483 = vrot.lane.b32.xlu0 %v454_v15, %s1831_s13  ;;  %1661 = vmatprep.mubr.msk.bf16.mxu0 %vm1834_vm7, %v2748_v63 }
  0x6e   : > { %635 = vrot.lane.b32.xlu1 %v604_v52, %s1833_s24 }
  0x6f   : > { %559 = vrot.lane.b32.xlu0 %v509_v12, %s1826_s30 }
  0x72   : > { %711 = vrot.lane.b32.xlu1 %v2143_v46, %s1828_s7  ;;  %1662 = vmatmul.mubr.msk.bf16.gmra.mrb[24].mxu0 %vm1059_vm8, %v1798_v10 }
  0x73   : > { %676 = vrot.lane.b32.xlu0 %v659_v54, %s1829_s8  ;;  %1665 = vmatprep.mubr.msk.bf16.mxu0 %vm1834_vm7, %v2748_v63 }
  0x76   : > { %828 = vrot.lane.b32.xlu1 %v2157_v38, %s1830_s11  ;;  %v2767_v38 = vld [vmem:[#allocation5_spill] sm:$0xff] }
  0x77   : > { %787 = vrot.lane.b32.xlu0 %v2197_v33, %s1832_s23  ;;  %v2768_v33 = vld [vmem:[#allocation7_spill] sm:$0xff] }
  0x7a   : > { %526 = vrot.lane.b32.xlu1 %v509_v12, %s1827_s6  ;;  %1666 = vmatmul.mubr.msk.bf16.gmra.mrb[28].mxu0 %vm1059_vm8, %v1799_v53 }
  0x7b   : > { %485 = vrot.lane.b32.xlu0 %v462_v19, %s1831_s13  ;;  %1669 = vmatprep.mubr.msk.bf16.mxu0 %vm1834_vm7, %v2748_v63  ;;  %v2772_v19 = vld [vmem:[#allocation3_spill] sm:$0xff] }
  0x7e   : > { %637 = vrot.lane.b32.xlu1 %v2204_v56, %s1833_s24 }
  0x7f   : > { %561 = vrot.lane.b32.xlu0 %v2179_v26, %s1826_s30 }
  0x82   : > { %713 = vrot.lane.b32.xlu1 %v2766_v40, %s1828_s7  ;;  %1670 = vmatmul.mubr.msk.bf16.gmra.mrb[32].mxu0 %vm1059_vm8, %v1800_v1 }
  0x83   : > { %678 = vrot.lane.b32.xlu0 %v2143_v46, %s1829_s8  ;;  %v2769_v46 = vld [vmem:[#allocation9_spill] sm:$0xff]  ;;  %1683 = vmatprep.mubr.msk.bf16.mxu0 %vm1834_vm7, %v2748_v63 }
  0x86   : > { %830 = vrot.lane.b32.xlu1 %v2767_v38, %s1830_s11 }
  0x87   : > { %789 = vrot.lane.b32.xlu0 %v2223_v42, %s1832_s23  ;;  %v2770_v42 = vld [vmem:[#allocation8_spill] sm:$0xff] }
  0x8a   : > { %487 = vrot.lane.b32.xlu1 %v2232_v17, %s1831_s13 }
  0x8b   : > { %471 = vrot.lane.b32.xlu0 %v2259_v9, %s1831_s13 }
  0x8c   : > { %v550_v56 = vpop.permute.xlu1 %549 }
  0x8d   : > { %v515_v26 = vpop.permute.xlu0 %514 }
  0x8e   : > { %528 = vrot.lane.b32.xlu1 %v2768_v33, %s1827_s6 }
  0x8f   : > { %512 = vrot.lane.b32.xlu0 %v2769_v46, %s1827_s6 }
  0x90   : > { %v702_v35 = vpop.permute.xlu1 %701 }
  0x91   : > { %v667_v3 = vpop.permute.xlu0 %666 }
  0x92   : > { %563 = vrot.lane.b32.xlu1 %v2770_v42, %s1826_s30 }
  0x93   : > { %547 = vrot.lane.b32.xlu0 %v2249_v0, %s1826_s30 }
  0x94   : > { %v819_v17 = vpop.permute.xlu1 %818 }
  0x95   : > { %v474_v9 = vpop.permute.xlu0 %473 }
  0x96   : > { %639 = vrot.lane.b32.xlu1 %v2293_v8, %s1833_s24  ;;  %v838_v28 = vsel %vm834_vm10, %v2771_v21, %v474_v9 }
  0x97   : > { %623 = vrot.lane.b32.xlu0 %v2299_v50, %s1833_s24  ;;  %v857_v11 = vsel %vm853_vm11, %v838_v28, %v515_v26 }
  0x98   : > { %v517_v34 = vpop.permute.xlu1 %516  ;;  %v876_v8 = vsel %vm872_vm12, %v857_v11, %v550_v56 }
  0x99   : > { %v778_v43 = vpop.permute.xlu0 %777 }
  0x9a   : > { %680 = vrot.lane.b32.xlu1 %v2287_v20, %s1829_s8 }
  0x9b   : > { %664 = vrot.lane.b32.xlu0 %v2309_v18, %s1829_s8 }
  0x9c   : > { %v626_v0 = vpop.permute.xlu1 %625 }
  0x9d   : > { %v895_v41 = vsel %vm891_vm13, %v876_v8, %v626_v0  ;;  %v476_v45 = vpop.permute.xlu0 %475 }
  0x9e   : > { %v914_v50 = vsel %vm910_vm14, %v895_v41, %v667_v3  ;;  %715 = vrot.lane.b32.xlu1 %v2314_v37, %s1828_s7  ;;  %v840_v14 = vsel %vm834_vm10, %v1910_v5, %v476_v45 }
  0x9f   : > { %v933_v20 = vsel %vm929_vm15, %v914_v50, %v702_v35  ;;  %699 = vrot.lane.b32.xlu0 %v2331_v44, %s1828_s7  ;;  %v859_v49 = vsel %vm853_vm11, %v840_v14, %v517_v34 }
  0xa0   : > { %v628_v18 = vpop.permute.xlu1 %627  ;;  %v952_v23 = vsel %vm948_vm0, %v933_v20, %v778_v43 }
  0xa1   : > { %v971_v47 = vsel %vm967_vm1, %v952_v23, %v819_v17  ;;  %v552_v58 = vpop.permute.xlu0 %551 }
  0xa2   : > { %791 = vrot.lane.b32.xlu1 %v2347_v57, %s1832_s23  ;;  %1688 = vmatmul.mubr.msk.bf16.vlgmr.msra.gmra.mrb[0].mxu1 %vm1223_vm2, %v971_v47  ;;  %v878_v37 = vsel %vm872_vm12, %v859_v49, %v552_v58 }
  0xa3   : > { %1691 = vmatprep.mubr.msk.bf16.mxu1 %vm1834_vm7, %v2748_v63  ;;  %775 = vrot.lane.b32.xlu0 %v2367_v62, %s1832_s23  ;;  %v897_v44 = vsel %vm891_vm13, %v878_v37, %v628_v18 }
  0xa4   : > { %v704_v5 = vpop.permute.xlu1 %703 }
  0xa5   : > { %v669_v55 = vpop.permute.xlu0 %668 }
  0xa6   : > { %832 = vrot.lane.b32.xlu1 %v2352_v4, %s1830_s11  ;;  %v916_v59 = vsel %vm910_vm14, %v897_v44, %v669_v55 }
  0xa7   : > { %816 = vrot.lane.b32.xlu0 %v2359_v32, %s1830_s11  ;;  %v935_v27 = vsel %vm929_vm15, %v916_v59, %v704_v5 }
  0xa8   : > { %v821_v57 = vpop.permute.xlu1 %820 }
  0xa9   : > { %v780_v25 = vpop.permute.xlu0 %779 }
  0xaa   : > { %v954_v48 = vsel %vm948_vm0, %v935_v27, %v780_v25 }
  0xab   : > { %v973_v62 = vsel %vm967_vm1, %v954_v48, %v821_v57 }
  0xac   : > { %v519_v16 = vpop.permute.xlu1 %518  ;;  %1692 = vmatmul.mubr.msk.bf16.gmra.mrb[4].mxu1 %vm1223_vm2, %v973_v62 }
  0xad   : > { %v478_v54 = vpop.permute.xlu0 %477  ;;  %1695 = vmatprep.mubr.msk.bf16.mxu1 %vm1834_vm7, %v2748_v63 }
  0xae   : > { %v842_v4 = vsel %vm834_vm10, %v1913_v6, %v478_v54 }
  0xaf   : > { %v861_v32 = vsel %vm853_vm11, %v842_v4, %v519_v16 }
  0xb0   : > { %v630_v61 = vpop.permute.xlu1 %629 }
  0xb1   : > { %v554_v39 = vpop.permute.xlu0 %553 }
  0xb2   : > { %v880_v30 = vsel %vm872_vm12, %v861_v32, %v554_v39 }
  0xb3   : > { %v899_v7 = vsel %vm891_vm13, %v880_v30, %v630_v61 }
  0xb4   : > { %v706_v13 = vpop.permute.xlu1 %705 }
  0xb5   : > { %v671_v2 = vpop.permute.xlu0 %670 }
  0xb6   : > { %v918_v15 = vsel %vm910_vm14, %v899_v7, %v671_v2 }
  0xb7   : > { %v937_v31 = vsel %vm929_vm15, %v918_v15, %v706_v13 }
  0xb8   : > { %v823_v52 = vpop.permute.xlu1 %822 }
  0xb9   : > { %v782_v12 = vpop.permute.xlu0 %781 }
  0xba   : > { %v956_v10 = vsel %vm948_vm0, %v937_v31, %v782_v12 }
  0xbb   : > { %v975_v6 = vsel %vm967_vm1, %v956_v10, %v823_v52 }
  0xbc   : > { %v521_v29 = vpop.permute.xlu1 %520  ;;  %1696 = vmatmul.mubr.msk.bf16.gmra.mrb[8].mxu1 %vm1223_vm2, %v975_v6 }
  0xbd   : > { %v480_v36 = vpop.permute.xlu0 %479  ;;  %1699 = vmatprep.mubr.msk.bf16.mxu1 %vm1834_vm7, %v2748_v63 }
  0xbe   : > { %v844_v53 = vsel %vm834_vm10, %v2772_v19, %v480_v36 }
  0xbf   : > { %v863_v38 = vsel %vm853_vm11, %v844_v53, %v521_v29 }
  0xc0   : > { %v632_v40 = vpop.permute.xlu1 %631 }
  0xc1   : > { %v556_v56 = vpop.permute.xlu0 %555 }
  0xc2   : > { %v882_v26 = vsel %vm872_vm12, %v863_v38, %v556_v56 }
  0xc3   : > { %v901_v1 = vsel %vm891_vm13, %v882_v26, %v632_v40 }
  0xc4   : > { %v708_v33 = vpop.permute.xlu1 %707 }
  0xc5   : > { %v673_v46 = vpop.permute.xlu0 %672 }
  0xc6   : > { %v920_v35 = vsel %vm910_vm14, %v901_v1, %v673_v46 }
  0xc7   : > { %v939_v42 = vsel %vm929_vm15, %v920_v35, %v708_v33 }
  0xc8   : > { %v825_v3 = vpop.permute.xlu1 %824 }
  0xc9   : > { %v784_v17 = vpop.permute.xlu0 %783 }
  0xca   : > { %v958_v9 = vsel %vm948_vm0, %v939_v42, %v784_v17 }
  0xcb   : > { %v977_v21 = vsel %vm967_vm1, %v958_v9, %v825_v3 }
  0xcc   : > { %v523_v28 = vpop.permute.xlu1 %522  ;;  %1700 = vmatmul.mubr.msk.bf16.gmra.mrb[12].mxu1 %vm1223_vm2, %v977_v21 }
  0xcd   : > { %v482_v34 = vpop.permute.xlu0 %481  ;;  %1703 = vmatprep.mubr.msk.bf16.mxu1 %vm1834_vm7, %v2748_v63 }
  0xce   : > { %v846_v11 = vsel %vm834_vm10, %v2009_v51, %v482_v34 }
  0xcf   : > { %v865_v0 = vsel %vm853_vm11, %v846_v11, %v523_v28  ;;  %v2773_v28 = vld [vmem:[#allocation6_spill] sm:$0xff] }
  0xd0   : > { %v634_v43 = vpop.permute.xlu1 %633 }
  0xd1   : > { %v558_v8 = vpop.permute.xlu0 %557 }
  0xd2   : > { %v884_v41 = vsel %vm872_vm12, %v865_v0, %v558_v8 }
  0xd3   : > { %v903_v45 = vsel %vm891_vm13, %v884_v41, %v634_v43 }
  0xd4   : > { %v710_v50 = vpop.permute.xlu1 %709 }
  0xd5   : > { %v675_v20 = vpop.permute.xlu0 %674 }
  0xd6   : > { %v922_v14 = vsel %vm910_vm14, %v903_v45, %v675_v20 }
  0xd7   : > { %v941_v23 = vsel %vm929_vm15, %v922_v14, %v710_v50 }
  0xd8   : > { %v827_v18 = vpop.permute.xlu1 %826 }
  0xd9   : > { %v786_v47 = vpop.permute.xlu0 %785 }
  0xda   : > { %v960_v49 = vsel %vm948_vm0, %v941_v23, %v786_v47 }
  0xdb   : > { %v979_v51 = vsel %vm967_vm1, %v960_v49, %v827_v18 }
  0xdc   : > { %v525_v58 = vpop.permute.xlu1 %524  ;;  %1704 = vmatmul.mubr.msk.bf16.gmra.mrb[16].mxu1 %vm1223_vm2, %v979_v51 }
  0xdd   : > { %v484_v37 = vpop.permute.xlu0 %483  ;;  %1707 = vmatprep.mubr.msk.bf16.mxu1 %vm1834_vm7, %v2748_v63 }
  0xde   : > { %v848_v5 = vsel %vm834_vm10, %v2040_v60, %v484_v37 }
  0xdf   : > { %v867_v55 = vsel %vm853_vm11, %v848_v5, %v525_v58 }
  0xe0   : > { %v636_v44 = vpop.permute.xlu1 %635 }
  0xe1   : > { %v560_v59 = vpop.permute.xlu0 %559 }
  0xe2   : > { %v886_v57 = vsel %vm872_vm12, %v867_v55, %v560_v59 }
  0xe3   : > { %v905_v25 = vsel %vm891_vm13, %v886_v57, %v636_v44 }
  0xe4   : > { %v712_v27 = vpop.permute.xlu1 %711 }
  0xe5   : > { %v677_v48 = vpop.permute.xlu0 %676 }
  0xe6   : > { %v924_v62 = vsel %vm910_vm14, %v905_v25, %v677_v48 }
  0xe7   : > { %v943_v54 = vsel %vm929_vm15, %v924_v62, %v712_v27 }
  0xe8   : > { %v829_v16 = vpop.permute.xlu1 %828 }
  0xe9   : > { %v788_v4 = vpop.permute.xlu0 %787 }
  0xea   : > { %v962_v61 = vsel %vm948_vm0, %v943_v54, %v788_v4 }
  0xeb   : > { %v981_v60 = vsel %vm967_vm1, %v962_v61, %v829_v16 }
  0xec   : > { %v527_v32 = vpop.permute.xlu1 %526  ;;  %1708 = vmatmul.mubr.msk.bf16.gmra.mrb[20].mxu1 %vm1223_vm2, %v981_v60 }
  0xed   : > { %v486_v39 = vpop.permute.xlu0 %485  ;;  %1711 = vmatprep.mubr.msk.bf16.mxu1 %vm1834_vm7, %v2748_v63 }
  0xee   : > { %v850_v30 = vsel %vm834_vm10, %v2240_v24, %v486_v39 }
  0xef   : > { %v869_v7 = vsel %vm853_vm11, %v850_v30, %v527_v32 }
  0xf0   : > { %v638_v13 = vpop.permute.xlu1 %637 }
  0xf1   : > { %v562_v2 = vpop.permute.xlu0 %561 }
  0xf2   : > { %v888_v15 = vsel %vm872_vm12, %v869_v7, %v562_v2 }
  0xf3   : > { %v907_v31 = vsel %vm891_vm13, %v888_v15, %v638_v13 }
  0xf4   : > { %v714_v52 = vpop.permute.xlu1 %713 }
  0xf5   : > { %v679_v12 = vpop.permute.xlu0 %678 }
  0xf6   : > { %v926_v10 = vsel %vm910_vm14, %v907_v31, %v679_v12 }
  0xf7   : > { %v945_v29 = vsel %vm929_vm15, %v926_v10, %v714_v52 }
  0xf8   : > { %v831_v6 = vpop.permute.xlu1 %830 }
  0xf9   : > { %v790_v36 = vpop.permute.xlu0 %789 }
  0xfa   : > { %v964_v19 = vsel %vm948_vm0, %v945_v29, %v790_v36 }
  0xfb   : > { %v983_v24 = vsel %vm967_vm1, %v964_v19, %v831_v6 }
  0xfc   : > { %v488_v53 = vpop.permute.xlu1 %487  ;;  %1712 = vmatmul.mubr.msk.bf16.gmra.mrb[24].mxu1 %vm1223_vm2, %v983_v24 }
  0xfd   : > { %v472_v40 = vpop.permute.xlu0 %471  ;;  %1715 = vmatprep.mubr.msk.bf16.mxu1 %vm1834_vm7, %v2748_v63  ;;  %v852_v17 = vsel %vm834_vm10, %v2053_v22, %v488_v53 }
  0xfe   : > { %v836_v34 = vsel %vm834_vm10, %v2773_v28, %v472_v40 }
 0x100   : > { %v529_v38 = vpop.permute.xlu1 %528 }
 0x101   : > { %v513_v56 = vpop.permute.xlu0 %512  ;;  %v871_v21 = vsel %vm853_vm11, %v852_v17, %v529_v38 }
 0x102   : > { %v855_v43 = vsel %vm853_vm11, %v836_v34, %v513_v56 }
 0x104   : > { %v564_v26 = vpop.permute.xlu1 %563 }
 0x105   : > { %v548_v33 = vpop.permute.xlu0 %547  ;;  %v890_v63 = vsel %vm872_vm12, %v871_v21, %v564_v26 }
 0x106   : > { %v874_v8 = vsel %vm872_vm12, %v855_v43, %v548_v33 }
 0x108   : > { %v640_v1 = vpop.permute.xlu1 %639 }
 0x109   : > { %v624_v46 = vpop.permute.xlu0 %623  ;;  %v909_v0 = vsel %vm891_vm13, %v890_v63, %v640_v1  ;;  %v2636_v1 = vld [vmem:[%s2720_s4] ss:$0 sm:$0xff] }
 0x10a   : > { %v893_v22 = vsel %vm891_vm13, %v874_v8, %v624_v46 }
 0x10c   : > { %v681_v35 = vpop.permute.xlu1 %680 }
 0x10d   : > { %v665_v3 = vpop.permute.xlu0 %664  ;;  %v928_v41 = vsel %vm910_vm14, %v909_v0, %v681_v35 }
 0x10e   : > { %v912_v20 = vsel %vm910_vm14, %v893_v22, %v665_v3 }
 0x110   : > { %v716_v42 = vpop.permute.xlu1 %715 }
 0x111   : > { %v700_v9 = vpop.permute.xlu0 %699  ;;  %v947_v45 = vsel %vm929_vm15, %v928_v41, %v716_v42 }
 0x112   : > { %v931_v23 = vsel %vm929_vm15, %v912_v20, %v700_v9 }
 0x114   : > { %v792_v11 = vpop.permute.xlu1 %791 }
 0x115   : > { %v776_v50 = vpop.permute.xlu0 %775  ;;  %v966_v14 = vsel %vm948_vm0, %v947_v45, %v792_v11  ;;  %v2611_v37 = vpop.f32.mrb[0].mxu0 }
 0x116   : > { %v950_v49 = vsel %vm948_vm0, %v931_v23, %v776_v50  ;;  %v1639_v5 = vpop.f32.mrb[1].mxu0 }
 0x117   : > { %v2614_v44 = vpop.f32.mrb[2].mxu0 }
 0x118   : > { %v833_v18 = vpop.permute.xlu1 %832  ;;  %v1640_v55 = vpop.f32.mrb[3].mxu0 }
 0x119   : > { %v985_v47 = vsel %vm967_vm1, %v966_v14, %v833_v18  ;;  %v817_v51 = vpop.permute.xlu0 %816 }
 0x11a   : > { %1716 = vmatmul.mubr.msk.bf16.gmra.mrb[28].mxu1 %vm1223_vm2, %v985_v47  ;;  %v969_v58 = vsel %vm967_vm1, %v950_v49, %v817_v51 }
 0x11b   : > { %1684 = vmatmul.mubr.msk.bf16.vlgmr.msra.gmra.mrb[36].mxu0 %vm1223_vm2, %v969_v58 }
 0x11d   : > { %v1133_v59 = vpop.f32.mrb[4].mxu0 }
 0x11e   : > { %v1643_v57 = vpop.f32.mrb[5].mxu0 }
 0x11f   : > { %v1136_v27 = vpop.f32.mrb[6].mxu0 }
 0x120   : > { %v1644_v25 = vpop.f32.mrb[7].mxu0 }
 0x125   : > { %v1141_v48 = vpop.f32.mrb[8].mxu0 }
 0x126   : > { %v1647_v62 = vpop.f32.mrb[9].mxu0 }
 0x127   : > { %v1144_v16 = vpop.f32.mrb[10].mxu0 }
 0x128   : > { %v1648_v54 = vpop.f32.mrb[11].mxu0 }
 0x12d   : > { %v1149_v4 = vpop.f32.mrb[12].mxu0 }
 0x12e   : > { %v1651_v61 = vpop.f32.mrb[13].mxu0 }
 0x12f   : > { %v1152_v60 = vpop.f32.mrb[14].mxu0 }
 0x130   : > { %v1652_v32 = vpop.f32.mrb[15].mxu0 }
 0x135   : > { %v1157_v39 = vpop.f32.mrb[16].mxu0 }
 0x136   : > { %v1655_v30 = vpop.f32.mrb[17].mxu0 }
 0x137   : > { %v1160_v13 = vpop.f32.mrb[18].mxu0 }
 0x138   : > { %v1656_v7 = vpop.f32.mrb[19].mxu0 }
 0x13d   : > { %v2616_v2 = vpop.f32.mrb[20].mxu0 }
 0x13e   : > { %v1659_v15 = vpop.f32.mrb[21].mxu0 }
 0x13f   : > { %v2618_v52 = vpop.f32.mrb[22].mxu0 }
 0x140   : > { %v1660_v31 = vpop.f32.mrb[23].mxu0 }
 0x145   : > { %v2620_v12 = vpop.f32.mrb[24].mxu0 }
 0x146   : > { %v1663_v10 = vpop.f32.mrb[25].mxu0 }
 0x147   : > { %v2622_v6 = vpop.f32.mrb[26].mxu0 }
 0x148   : > { %v1664_v29 = vpop.f32.mrb[27].mxu0 }
 0x14d   : > { %v2624_v36 = vpop.f32.mrb[28].mxu0 }
 0x14e   : > { %v1667_v19 = vpop.f32.mrb[29].mxu0 }
 0x14f   : > { %v2626_v24 = vpop.f32.mrb[30].mxu0 }
 0x150   : > { %v1668_v53 = vpop.f32.mrb[31].mxu0 }
 0x155   : > { %v2628_v40 = vpop.f32.mrb[32].mxu0 }
 0x156   : > { %v1671_v38 = vpop.f32.mrb[33].mxu0 }
 0x157   : > { %v2630_v56 = vpop.f32.mrb[34].mxu0 }
 0x158   : > { %v1672_v26 = vpop.f32.mrb[35].mxu0 }
 0x175   : > { %v1288_v33 = vpop.f32.mrb[0].mxu1 }
 0x176   : > { %v1289_v46 = vadd.f32 %v1288_v33, %v1133_v59  ;;  %v1689_v35 = vpop.f32.mrb[1].mxu1 }
 0x177   : > { %v1291_v3 = vpop.f32.mrb[2].mxu1 }
 0x178   : > { %v1360_v42 = vadd.f32 %v2636_v1, %v1289_v46  ;;  %v1292_v17 = vadd.f32 %v1291_v3, %v1136_v27  ;;  %v1690_v9 = vpop.f32.mrb[3].mxu1 }
 0x17a   : > { %v1378_v21 = vmax.f32 %v1360_v42, 0.0  ;;  %v1361_v28 = vadd.f32 %v2636_v1, %v1292_v17 }
 0x17c   : > { %1396 = vst.msk [vmem:[%s2642_s9 + $0x10] sm:$0xff] %vm834_vm10, %v1378_v21  ;;  %v1379_v34 = vmax.f32 %v1361_v28, 0.0 }
 0x17e   : > { %1397 = vst.msk [vmem:[%s2642_s9 + $0x18] sm:$0xff] %vm834_vm10, %v1379_v34 }
 0x17f   : > { %v1296_v63 = vpop.f32.mrb[4].mxu1 }
 0x180   : > { %v1297_v11 = vadd.f32 %v1296_v63, %v1141_v48  ;;  %v1693_v43 = vpop.f32.mrb[5].mxu1 }
 0x181   : > { %v1299_v0 = vpop.f32.mrb[6].mxu1 }
 0x182   : > { %v1362_v8 = vadd.f32 %v2636_v1, %v1297_v11  ;;  %v1300_v41 = vadd.f32 %v1299_v0, %v1144_v16  ;;  %v1694_v50 = vpop.f32.mrb[7].mxu1 }
 0x184   : > { %v1380_v22 = vmax.f32 %v1362_v8, 0.0  ;;  %v1363_v45 = vadd.f32 %v2636_v1, %v1300_v41 }
 0x186   : > { %1398 = vst.msk [vmem:[%s2642_s9 + $0x20] sm:$0xff] %vm834_vm10, %v1380_v22  ;;  %v1381_v20 = vmax.f32 %v1363_v45, 0.0 }
 0x188   : > { %1399 = vst.msk [vmem:[%s2642_s9 + $0x28] sm:$0xff] %vm834_vm10, %v1381_v20 }
 0x18f   : > { %v1304_v14 = vpop.f32.mrb[8].mxu1 }
 0x190   : > { %v1305_v18 = vadd.f32 %v1304_v14, %v1149_v4  ;;  %v1697_v23 = vpop.f32.mrb[9].mxu1 }
 0x191   : > { %v1307_v47 = vpop.f32.mrb[10].mxu1 }
 0x192   : > { %v1364_v49 = vadd.f32 %v2636_v1, %v1305_v18  ;;  %v1308_v51 = vadd.f32 %v1307_v47, %v1152_v60  ;;  %v1698_v58 = vpop.f32.mrb[11].mxu1 }
 0x194   : > { %v1382_v5 = vmax.f32 %v1364_v49, 0.0  ;;  %v1365_v55 = vadd.f32 %v2636_v1, %v1308_v51 }
 0x196   : > { %1400 = vst.msk [vmem:[%s2642_s9 + $0x30] sm:$0xff] %vm834_vm10, %v1382_v5  ;;  %v1383_v59 = vmax.f32 %v1365_v55, 0.0 }
 0x198   : > { %1401 = vst.msk [vmem:[%s2642_s9 + $0x38] sm:$0xff] %vm834_vm10, %v1383_v59 }
 0x19f   : > { %v1312_v57 = vpop.f32.mrb[12].mxu1 }
 0x1a0   : > { %v1313_v27 = vadd.f32 %v1312_v57, %v1157_v39  ;;  %v1701_v25 = vpop.f32.mrb[13].mxu1 }
 0x1a1   : > { %v1315_v48 = vpop.f32.mrb[14].mxu1 }
 0x1a2   : > { %v1366_v62 = vadd.f32 %v2636_v1, %v1313_v27  ;;  %v1316_v16 = vadd.f32 %v1315_v48, %v1160_v13  ;;  %v1702_v54 = vpop.f32.mrb[15].mxu1 }
 0x1a4   : > { %v1384_v4 = vmax.f32 %v1366_v62, 0.0  ;;  %v1367_v61 = vadd.f32 %v2636_v1, %v1316_v16 }
 0x1a6   : > { %1402 = vst.msk [vmem:[%s2642_s9 + $0x40] sm:$0xff] %vm834_vm10, %v1384_v4  ;;  %v1385_v60 = vmax.f32 %v1367_v61, 0.0 }
 0x1a8   : > { %1403 = vst.msk [vmem:[%s2642_s9 + $0x48] sm:$0xff] %vm834_vm10, %v1385_v60 }
 0x1af   : > { %v1320_v32 = vpop.f32.mrb[16].mxu1 }
 0x1b0   : > { %v1321_v30 = vadd.f32 %v1320_v32, %v2616_v2  ;;  %v1705_v39 = vpop.f32.mrb[17].mxu1 }
 0x1b1   : > { %v1323_v7 = vpop.f32.mrb[18].mxu1 }
 0x1b2   : > { %v1368_v15 = vadd.f32 %v2636_v1, %v1321_v30  ;;  %v1324_v13 = vadd.f32 %v1323_v7, %v2618_v52  ;;  %v1706_v31 = vpop.f32.mrb[19].mxu1 }
 0x1b4   : > { %v1386_v10 = vmax.f32 %v1368_v15, 0.0  ;;  %v1369_v29 = vadd.f32 %v2636_v1, %v1324_v13 }
 0x1b6   : > { %1404 = vst.msk [vmem:[%s2642_s9 + $0x50] sm:$0xff] %vm834_vm10, %v1386_v10  ;;  %v1387_v19 = vmax.f32 %v1369_v29, 0.0 }
 0x1b8   : > { %1405 = vst.msk [vmem:[%s2642_s9 + $0x58] sm:$0xff] %vm834_vm10, %v1387_v19 }
 0x1bf   : > { %v1328_v53 = vpop.f32.mrb[20].mxu1 }
 0x1c0   : > { %v1329_v2 = vadd.f32 %v1328_v53, %v2620_v12  ;;  %v1709_v38 = vpop.f32.mrb[21].mxu1 }
 0x1c1   : > { %v1331_v26 = vpop.f32.mrb[22].mxu1 }
 0x1c2   : > { %v1370_v33 = vadd.f32 %v2636_v1, %v1329_v2  ;;  %v1332_v52 = vadd.f32 %v1331_v26, %v2622_v6  ;;  %v1710_v46 = vpop.f32.mrb[23].mxu1 }
 0x1c4   : > { %v1388_v35 = vmax.f32 %v1370_v33, 0.0  ;;  %v1371_v3 = vadd.f32 %v2636_v1, %v1332_v52 }
 0x1c6   : > { %1406 = vst.msk [vmem:[%s2642_s9 + $0x60] sm:$0xff] %vm834_vm10, %v1388_v35  ;;  %v1389_v42 = vmax.f32 %v1371_v3, 0.0 }
 0x1c8   : > { %1407 = vst.msk [vmem:[%s2642_s9 + $0x68] sm:$0xff] %vm834_vm10, %v1389_v42 }
 0x1cf   : > { %v1336_v17 = vpop.f32.mrb[24].mxu1 }
 0x1d0   : > { %v1337_v12 = vadd.f32 %v1336_v17, %v2624_v36  ;;  %v1713_v9 = vpop.f32.mrb[25].mxu1 }
 0x1d1   : > { %v1339_v21 = vpop.f32.mrb[26].mxu1 }
 0x1d2   : > { %v1372_v28 = vadd.f32 %v2636_v1, %v1337_v12  ;;  %v1340_v6 = vadd.f32 %v1339_v21, %v2626_v24  ;;  %v1714_v34 = vpop.f32.mrb[27].mxu1 }
 0x1d4   : > { %v1390_v63 = vmax.f32 %v1372_v28, 0.0  ;;  %v1373_v11 = vadd.f32 %v2636_v1, %v1340_v6 }
 0x1d6   : > { %1408 = vst.msk [vmem:[%s2642_s9 + $0x70] sm:$0xff] %vm834_vm10, %v1390_v63  ;;  %v1391_v43 = vmax.f32 %v1373_v11, 0.0 }
 0x1d8   : > { %1409 = vst.msk [vmem:[%s2642_s9 + $0x78] sm:$0xff] %vm834_vm10, %v1391_v43 }
 0x1ed   : > { %v1344_v0 = vpop.f32.mrb[28].mxu1 }
 0x1ee   : > { %v1345_v8 = vadd.f32 %v1344_v0, %v2628_v40  ;;  %v1717_v36 = vpop.f32.mrb[29].mxu1  ;;  %v1280_v41 = vpop.f32.mrb[36].mxu0 }
 0x1ef   : > { %v1347_v50 = vpop.f32.mrb[30].mxu1  ;;  %v1281_v22 = vadd.f32 %v1280_v41, %v2611_v37  ;;  %v1685_v45 = vpop.f32.mrb[37].mxu0 }
 0x1f0   : > { %v1374_v24 = vadd.f32 %v2636_v1, %v1345_v8  ;;  %v1348_v20 = vadd.f32 %v1347_v50, %v2630_v56  ;;  %v1718_v14 = vpop.f32.mrb[31].mxu1  ;;  %v1283_v18 = vpop.f32.mrb[38].mxu0 }
 0x1f1   : > { %v1358_v23 = vadd.f32 %v2636_v1, %v1281_v22  ;;  %v1284_v40 = vadd.f32 %v1283_v18, %v2614_v44  ;;  %v1686_v51 = vpop.f32.mrb[39].mxu0 }
 0x1f2   : > { %v1392_v47 = vmax.f32 %v1374_v24, 0.0  ;;  %v1375_v49 = vadd.f32 %v2636_v1, %v1348_v20 }
 0x1f3   : > { %v1376_v58 = vmax.f32 %v1358_v23, 0.0  ;;  %v1359_v37 = vadd.f32 %v2636_v1, %v1284_v40 }
 0x1f4   : > { %1410 = vst.msk [vmem:[%s2642_s9 + $0x80] sm:$0xff] %vm834_vm10, %v1392_v47  ;;  %v1393_v5 = vmax.f32 %v1375_v49, 0.0 }
 0x1f5   : > { %1394 = vst.msk [vmem:[%s2642_s9] sm:$0xff] %vm834_vm10, %v1376_v58  ;;  %v1377_v55 = vmax.f32 %v1359_v37, 0.0 }
 0x1f6   : > { %1411 = vst.msk [vmem:[%s2642_s9 + $0x88] sm:$0xff] %vm834_vm10, %v1393_v5 }
 0x1f7   : > { %1395 = vst.msk [vmem:[%s2642_s9 + $0x8] sm:$0xff] %vm834_vm10, %v1377_v55 }
 0x1f8 PF: > { %s15_s20 = sadd.s32 1, %s1823_s20   ;;  %s2774_s18 = smov %s1819_s19 }
 0x1f9   : > { %p12_p5 = scmp.ge.s32.totalorder %s15_s20, 6   ;;  %s2775_s19 = smov %s2777_s21 }
 0x1fb   :  { %14 = sbr.rel (!%p12_p5) target bundleno = 2 (0x2), region = 82 }

</bundles_post_ra>
